<compile_context>
chip_gen: v6e
topology: v6e:2x2x1
jax: 0.10.0
libtpu: 0.0.40
codegen_flags: <defaults>
</compile_context>

<pallas_src>
import jax
import jax.numpy as jnp
from jax.experimental import pallas as pl
from jax.experimental.pallas import tpu as pltpu

EPS = 1e-5


def _fold_bn(gamma, beta, mean, var):
    scale = gamma / jnp.sqrt(var + EPS)
    return scale, beta - mean * scale


def _make_kernel(stride, has_proj, Ho, Wo, Cin, Cout):
    n_planes = 1 if stride == 1 else 4

    def kernel(*refs):
        planes = refs[:n_planes]
        w1_ref, b1_ref, w2_ref, b2_ref = refs[n_planes:n_planes + 4]
        if has_proj:
            wsk_ref, bsk_ref = refs[n_planes + 4:n_planes + 6]
        o_ref = refs[-1]

        # ---- conv1 (3x3, stride folded into parity planes) + folded BN1 + ReLU ----
        # One matmul with K = 9*Cin; the center tap doubles as the skip-path input.
        taps = []
        for kh in range(3):
            for kw in range(3):
                if stride == 1:
                    t = planes[0][0, kh:kh + Ho, kw:kw + Wo, :]
                else:
                    p = planes[(kh & 1) * 2 + (kw & 1)]
                    t = p[0, kh // 2:kh // 2 + Ho, kw // 2:kw // 2 + Wo, :]
                taps.append(t)
        skip_in = taps[4]                      # center tap == x[::s, ::s] window
        if has_proj:
            taps_bf = taps                     # planes already bf16
        else:
            taps_bf = [t.astype(jnp.bfloat16) for t in taps]   # plane is f32

        slab1 = jnp.concatenate(taps_bf, axis=-1).reshape(Ho * Wo, 9 * Cin)
        h = jnp.dot(slab1, w1_ref[...], preferred_element_type=jnp.float32)
        h = jnp.maximum(h + b1_ref[...], 0.0)
        # TODO(synk): Dropout2d is only active in training mode; eval-mode forward is identity.

        # ---- conv2 (3x3, stride 1) + folded BN2 ----
        # Zero-pad in H via a leading-dim concat; W-shifts via XLU roll + hoisted edge
        # masks (no VMEM scratch, no per-step memset, no sublane-misaligned stores).
        h3 = h.reshape(Ho, Wo, Cout)
        zrow = jnp.zeros((1, Wo, Cout), jnp.float32)
        hpad = jnp.concatenate([zrow, h3, zrow], axis=0)          # (Ho+2, Wo, Cout)
        wcol = jax.lax.broadcasted_iota(jnp.int32, (Ho, Wo, Cout), 1)
        mask_l = wcol >= 1
        mask_r = wcol <= Wo - 2
        zeros3 = jnp.zeros((Ho, Wo, Cout), jnp.float32)
        taps2 = []
        for kh in range(3):
            base = hpad[kh:kh + Ho]                               # (Ho, Wo, Cout)
            for kw in range(3):
                if kw == 1:
                    t = base
                elif kw == 0:                                     # needs h[:, j-1]
                    t = jnp.where(mask_l, pltpu.roll(base, shift=1, axis=1), zeros3)
                else:                                             # kw == 2: needs h[:, j+1]
                    t = jnp.where(mask_r, pltpu.roll(base, shift=Wo - 1, axis=1), zeros3)
                taps2.append(t.astype(jnp.bfloat16))
        slab2 = jnp.concatenate(taps2, axis=-1).reshape(Ho * Wo, 9 * Cout)
        out = jnp.dot(slab2, w2_ref[...], preferred_element_type=jnp.float32) + b2_ref[...]

        # ---- skip path (reuses the conv1 center tap; no separate input) ----
        if has_proj:
            sk = jnp.dot(skip_in.reshape(Ho * Wo, Cin), wsk_ref[...],
                         preferred_element_type=jnp.float32) + bsk_ref[...]
        else:
            sk = skip_in.reshape(Ho * Wo, Cin).astype(jnp.float32)   # exact f32 identity add

        # ---- residual add + ReLU ----
        o_ref[0] = jnp.maximum(out + sk, 0.0).astype(o_ref.dtype)

    return kernel


def residual_block_forward(x_nchw, params, stride):
    """x_nchw: (N, Cin, H, W) float32 (PyTorch layout).  Returns NHWC (N, Ho, Wo, Cout) f32."""
    assert stride in (1, 2)
    # TODO(synk): hoist the NCHW->NHWC transpose out of per-block wrappers when chaining blocks.
    x = jnp.transpose(x_nchw, (0, 2, 3, 1)).astype(jnp.float32)   # -> NHWC
    N, H, W, Cin = x.shape
    Cout = params["w1"].shape[-1]
    if stride == 2:
        assert H % 2 == 0 and W % 2 == 0
    Ho = (H + 2 - 3) // stride + 1
    Wo = (W + 2 - 3) // stride + 1
    has_proj = bool(params["has_proj"])
    if not has_proj:
        assert stride == 1 and Cin == Cout

    # Fold BN (inference) into the conv weights; only per-channel biases stay in-kernel.
    s1, b1 = _fold_bn(params["bn1_gamma"], params["bn1_beta"],
                      params["bn1_mean"], params["bn1_var"])
    s2, b2 = _fold_bn(params["bn2_gamma"], params["bn2_beta"],
                      params["bn2_mean"], params["bn2_var"])
    w1 = (params["w1"].reshape(9 * Cin, Cout) * s1[None, :]).astype(jnp.bfloat16)
    w2 = (params["w2"].reshape(9 * Cout, Cout) * s2[None, :]).astype(jnp.bfloat16)
    b1_2d = b1.reshape(1, Cout).astype(jnp.float32)
    b2_2d = b2.reshape(1, Cout).astype(jnp.float32)

    # Padded input, passed once.  stride 2 -> 4 H/W parity planes (still exactly one copy
    # of the data) so all 9 conv1 taps are plain contiguous slices in the kernel.
    # Identity-skip blocks keep the plane in f32 so the residual add stays exact (conv
    # taps are cast to bf16 in-kernel); projection blocks use bf16 planes directly.
    plane_dtype = jnp.bfloat16 if has_proj else jnp.float32
    xp = jnp.pad(x, ((0, 0), (1, 1), (1, 1), (0, 0)))
    if stride == 1:
        planes = [xp.astype(plane_dtype)]
    else:
        planes = [xp[:, a::2, b::2, :].astype(plane_dtype)
                  for a in (0, 1) for b in (0, 1)]

    inputs = list(planes)
    in_specs = [pl.BlockSpec((1,) + p.shape[1:], lambda n: (n, 0, 0, 0)) for p in planes]

    inputs += [w1, b1_2d, w2, b2_2d]
    in_specs += [
        pl.BlockSpec((9 * Cin, Cout), lambda n: (0, 0)),
        pl.BlockSpec((1, Cout), lambda n: (0, 0)),
        pl.BlockSpec((9 * Cout, Cout), lambda n: (0, 0)),
        pl.BlockSpec((1, Cout), lambda n: (0, 0)),
    ]
    if has_proj:
        ss, bs = _fold_bn(params["bns_gamma"], params["bns_beta"],
                          params["bns_mean"], params["bns_var"])
        wsk = (params["wskip"].reshape(Cin, Cout) * ss[None, :]).astype(jnp.bfloat16)
        bsk = bs.reshape(1, Cout).astype(jnp.float32)
        inputs += [wsk, bsk]
        in_specs += [pl.BlockSpec((Cin, Cout), lambda n: (0, 0)),
                     pl.BlockSpec((1, Cout), lambda n: (0, 0))]

    kernel = _make_kernel(stride, has_proj, Ho, Wo, Cin, Cout)

    # TODO(synk): for v7x (2 TCs, 64 MiB VMEM) at N==1 or large feature maps, add a
    # row-tiled "parallel" grid axis with halo DMA so both cores stay busy and the
    # per-step VMEM block stays within budget.
    out = pl.pallas_call(
        kernel,
        out_shape=jax.ShapeDtypeStruct((N, Ho * Wo, Cout), jnp.float32),
        grid_spec=pltpu.PrefetchScalarGridSpec(
            num_scalar_prefetch=0,
            grid=(N,),
            in_specs=in_specs,
            out_specs=pl.BlockSpec((1, Ho * Wo, Cout), lambda n: (n, 0, 0)),
        ),
        compiler_params=pltpu.CompilerParams(dimension_semantics=("parallel",)),
    )(*inputs)
    return out.reshape(N, Ho, Wo, Cout)   # NHWC


def init_params(key, cin, cout, stride):
    ks = jax.random.split(key, 16)
    p = {
        "w1": jax.random.normal(ks[0], (3, 3, cin, cout), jnp.float32) * 0.1,
        "w2": jax.random.normal(ks[1], (3, 3, cout, cout), jnp.float32) * 0.1,
        "bn1_gamma": jax.random.uniform(ks[2], (cout,), minval=0.5, maxval=1.5),
        "bn1_beta": jax.random.normal(ks[3], (cout,)) * 0.1,
        "bn1_mean": jax.random.normal(ks[4], (cout,)) * 0.1,
        "bn1_var": jax.random.uniform(ks[5], (cout,), minval=0.5, maxval=1.5),
        "bn2_gamma": jax.random.uniform(ks[6], (cout,), minval=0.5, maxval=1.5),
        "bn2_beta": jax.random.normal(ks[7], (cout,)) * 0.1,
        "bn2_mean": jax.random.normal(ks[8], (cout,)) * 0.1,
        "bn2_var": jax.random.uniform(ks[9], (cout,), minval=0.5, maxval=1.5),
    }
    has_proj = (stride != 1) or (cin != cout)
    p["has_proj"] = has_proj
    if has_proj:
        p["wskip"] = jax.random.normal(ks[10], (1, 1, cin, cout), jnp.float32) * 0.1
        p["bns_gamma"] = jax.random.uniform(ks[11], (cout,), minval=0.5, maxval=1.5)
        p["bns_beta"] = jax.random.normal(ks[12], (cout,)) * 0.1
        p["bns_mean"] = jax.random.normal(ks[13], (cout,)) * 0.1
        p["bns_var"] = jax.random.uniform(ks[14], (cout,), minval=0.5, maxval=1.5)
    else:
        p["wskip"] = jnp.eye(cin, dtype=jnp.float32).reshape(1, 1, cin, cout)
    return p


def ref_forward(x_nchw, params, stride):
    """Pure-JAX reference (inference semantics), NHWC output."""
    x = jnp.transpose(x_nchw, (0, 2, 3, 1)).astype(jnp.float32)
    dn = ("NHWC", "HWIO", "NHWC")
    hp = jax.lax.Precision.HIGHEST

    def bn(y, g, b, m, v):
        return (y - m) / jnp.sqrt(v + EPS) * g + b

    out = jax.lax.conv_general_dilated(x, params["w1"], (stride, stride),
                                       ((1, 1), (1, 1)), dimension_numbers=dn,
                                       precision=hp)
    out = jnp.maximum(bn(out, params["bn1_gamma"], params["bn1_beta"],
                         params["bn1_mean"], params["bn1_var"]), 0.0)
    out = jax.lax.conv_general_dilated(out, params["w2"], (1, 1),
                                       ((1, 1), (1, 1)), dimension_numbers=dn,
                                       precision=hp)
    out = bn(out, params["bn2_gamma"], params["bn2_beta"],
             params["bn2_mean"], params["bn2_var"])
    if params["has_proj"]:
        idn = jax.lax.conv_general_dilated(x, params["wskip"], (stride, stride),
                                           "VALID", dimension_numbers=dn,
                                           precision=hp)
        idn = bn(idn, params["bns_gamma"], params["bns_beta"],
                 params["bns_mean"], params["bns_var"])
    else:
        idn = x
    return jnp.maximum(out + idn, 0.0)


if __name__ == "__main__":
    key = jax.random.PRNGKey(0)
    kx1, kp1, kx2, kp2 = jax.random.split(key, 4)

    # Config A: stride-2 block with 1x1-conv projection skip.
    N, Cin, H, W, Cout, stride = 2, 4, 16, 16, 8, 2
    x = jax.random.normal(kx1, (N, Cin, H, W), jnp.float32)      # NCHW, like PyTorch
    params = init_params(kp1, Cin, Cout, stride)
    out = jax.block_until_ready(residual_block_forward(x, params, stride))
    assert out.shape == (N, H // stride, W // stride, Cout), out.shape
    ref = ref_forward(x, params, stride)
    err = float(jnp.max(jnp.abs(out - ref)))
    tol = 1e-2 + 1e-2 * float(jnp.max(jnp.abs(ref)))             # bf16-matmul tolerance
    assert err < tol, f"stride-2 mismatch vs reference: {err} (tol {tol})"

    # Config B: stride-1 identity-skip block (no projection path).
    N2, C2, H2, W2 = 2, 8, 16, 16
    x2 = jax.random.normal(kx2, (N2, C2, H2, W2), jnp.float32)
    params2 = init_params(kp2, C2, C2, 1)
    out2 = jax.block_until_ready(residual_block_forward(x2, params2, 1))
    assert out2.shape == (N2, H2, W2, C2), out2.shape
    ref2 = ref_forward(x2, params2, 1)
    err2 = float(jnp.max(jnp.abs(out2 - ref2)))
    tol2 = 1e-2 + 1e-2 * float(jnp.max(jnp.abs(ref2)))
    assert err2 < tol2, f"stride-1 mismatch vs reference: {err2} (tol {tol2})"

    print("KERNEL_OK")
</pallas_src>

<mosaic_0001>
module attributes {stable_mosaic.version = 11 : i64} {
  func.func @kernel(%arg0: i32, %arg1: memref<1x9x9x4xbf16, #tpu.memory_space<vmem>>, %arg2: memref<1x9x9x4xbf16, #tpu.memory_space<vmem>>, %arg3: memref<1x9x9x4xbf16, #tpu.memory_space<vmem>>, %arg4: memref<1x9x9x4xbf16, #tpu.memory_space<vmem>>, %arg5: memref<36x8xbf16, #tpu.memory_space<vmem>>, %arg6: memref<1x8xf32, #tpu.memory_space<vmem>>, %arg7: memref<72x8xbf16, #tpu.memory_space<vmem>>, %arg8: memref<1x8xf32, #tpu.memory_space<vmem>>, %arg9: memref<4x8xbf16, #tpu.memory_space<vmem>>, %arg10: memref<1x8xf32, #tpu.memory_space<vmem>>, %arg11: memref<1x64x8xf32, #tpu.memory_space<vmem>>) attributes {dimension_semantics = [#tpu.dimension_semantics<parallel>], iteration_bounds = array<i64: 2>, scalar_prefetch = 0 : i64, scratch_operands = 0 : i64, tpu.core_type = #tpu.core_type<tc>, window_params = [{transform_indices = @transform_0, window_bounds = array<i64: 1, 9, 9, 4>}, {transform_indices = @transform_1, window_bounds = array<i64: 1, 9, 9, 4>}, {transform_indices = @transform_2, window_bounds = array<i64: 1, 9, 9, 4>}, {transform_indices = @transform_3, window_bounds = array<i64: 1, 9, 9, 4>}, {pipeline_mode = #tpu.pipeline_mode<synchronous>, transform_indices = @transform_4, window_bounds = array<i64: 36, 8>}, {pipeline_mode = #tpu.pipeline_mode<synchronous>, transform_indices = @transform_5, window_bounds = array<i64: 1, 8>}, {pipeline_mode = #tpu.pipeline_mode<synchronous>, transform_indices = @transform_6, window_bounds = array<i64: 72, 8>}, {pipeline_mode = #tpu.pipeline_mode<synchronous>, transform_indices = @transform_7, window_bounds = array<i64: 1, 8>}, {pipeline_mode = #tpu.pipeline_mode<synchronous>, transform_indices = @transform_8, window_bounds = array<i64: 4, 8>}, {pipeline_mode = #tpu.pipeline_mode<synchronous>, transform_indices = @transform_9, window_bounds = array<i64: 1, 8>}, {transform_indices = @transform_10, window_bounds = array<i64: 1, 64, 8>}]} {
    %c0 = arith.constant 0 : index
    %c0_0 = arith.constant 0 : index
    %c0_1 = arith.constant 0 : index
    %c0_2 = arith.constant 0 : index
    %0 = vector.load %arg1[%c0, %c0_0, %c0_1, %c0_2] : memref<1x9x9x4xbf16, #tpu.memory_space<vmem>>, vector<1x8x8x4xbf16>
    %1 = vector.shape_cast %0 : vector<1x8x8x4xbf16> to vector<8x8x4xbf16>
    %c0_3 = arith.constant 0 : index
    %c0_4 = arith.constant 0 : index
    %c0_5 = arith.constant 0 : index
    %c0_6 = arith.constant 0 : index
    %2 = vector.load %arg2[%c0_3, %c0_4, %c0_5, %c0_6] : memref<1x9x9x4xbf16, #tpu.memory_space<vmem>>, vector<1x8x8x4xbf16>
    %3 = vector.shape_cast %2 : vector<1x8x8x4xbf16> to vector<8x8x4xbf16>
    %c0_7 = arith.constant 0 : index
    %c0_8 = arith.constant 0 : index
    %c1 = arith.constant 1 : index
    %c0_9 = arith.constant 0 : index
    %4 = vector.load %arg1[%c0_7, %c0_8, %c1, %c0_9] : memref<1x9x9x4xbf16, #tpu.memory_space<vmem>>, vector<1x8x8x4xbf16>
    %5 = vector.shape_cast %4 : vector<1x8x8x4xbf16> to vector<8x8x4xbf16>
    %c0_10 = arith.constant 0 : index
    %c0_11 = arith.constant 0 : index
    %c0_12 = arith.constant 0 : index
    %c0_13 = arith.constant 0 : index
    %6 = vector.load %arg3[%c0_10, %c0_11, %c0_12, %c0_13] : memref<1x9x9x4xbf16, #tpu.memory_space<vmem>>, vector<1x8x8x4xbf16>
    %7 = vector.shape_cast %6 : vector<1x8x8x4xbf16> to vector<8x8x4xbf16>
    %c0_14 = arith.constant 0 : index
    %c0_15 = arith.constant 0 : index
    %c0_16 = arith.constant 0 : index
    %c0_17 = arith.constant 0 : index
    %8 = vector.load %arg4[%c0_14, %c0_15, %c0_16, %c0_17] : memref<1x9x9x4xbf16, #tpu.memory_space<vmem>>, vector<1x8x8x4xbf16>
    %9 = vector.shape_cast %8 : vector<1x8x8x4xbf16> to vector<8x8x4xbf16>
    %c0_18 = arith.constant 0 : index
    %c0_19 = arith.constant 0 : index
    %c1_20 = arith.constant 1 : index
    %c0_21 = arith.constant 0 : index
    %10 = vector.load %arg3[%c0_18, %c0_19, %c1_20, %c0_21] : memref<1x9x9x4xbf16, #tpu.memory_space<vmem>>, vector<1x8x8x4xbf16>
    %11 = vector.shape_cast %10 : vector<1x8x8x4xbf16> to vector<8x8x4xbf16>
    %c0_22 = arith.constant 0 : index
    %c1_23 = arith.constant 1 : index
    %c0_24 = arith.constant 0 : index
    %c0_25 = arith.constant 0 : index
    %12 = vector.load %arg1[%c0_22, %c1_23, %c0_24, %c0_25] : memref<1x9x9x4xbf16, #tpu.memory_space<vmem>>, vector<1x8x8x4xbf16>
    %13 = vector.shape_cast %12 : vector<1x8x8x4xbf16> to vector<8x8x4xbf16>
    %c0_26 = arith.constant 0 : index
    %c1_27 = arith.constant 1 : index
    %c0_28 = arith.constant 0 : index
    %c0_29 = arith.constant 0 : index
    %14 = vector.load %arg2[%c0_26, %c1_27, %c0_28, %c0_29] : memref<1x9x9x4xbf16, #tpu.memory_space<vmem>>, vector<1x8x8x4xbf16>
    %15 = vector.shape_cast %14 : vector<1x8x8x4xbf16> to vector<8x8x4xbf16>
    %c0_30 = arith.constant 0 : index
    %c1_31 = arith.constant 1 : index
    %c1_32 = arith.constant 1 : index
    %c0_33 = arith.constant 0 : index
    %16 = vector.load %arg1[%c0_30, %c1_31, %c1_32, %c0_33] : memref<1x9x9x4xbf16, #tpu.memory_space<vmem>>, vector<1x8x8x4xbf16>
    %17 = vector.shape_cast %16 : vector<1x8x8x4xbf16> to vector<8x8x4xbf16>
    %18 = tpu.concatenate %1, %3, %5, %7, %9, %11, %13, %15, %17 in 2 : vector<8x8x4xbf16>, vector<8x8x4xbf16>, vector<8x8x4xbf16>, vector<8x8x4xbf16>, vector<8x8x4xbf16>, vector<8x8x4xbf16>, vector<8x8x4xbf16>, vector<8x8x4xbf16>, vector<8x8x4xbf16> -> vector<8x8x36xbf16>
    %19 = vector.shape_cast %18 : vector<8x8x36xbf16> to vector<64x36xbf16>
    %c0_34 = arith.constant 0 : index
    %c0_35 = arith.constant 0 : index
    %20 = vector.load %arg5[%c0_34, %c0_35] : memref<36x8xbf16, #tpu.memory_space<vmem>>, vector<36x8xbf16>
    %cst = arith.constant dense<0.000000e+00> : vector<64x8xf32>
    %21 = tpu.matmul %19, %20, %cst {dimension_numbers = #tpu.dot_dimension_numbers<[1], [0], [0], [1], [0, 0, 1, 1], [], []>} : vector<64x36xbf16>, vector<36x8xbf16>, vector<64x8xf32> -> vector<64x8xf32>
    %c0_36 = arith.constant 0 : index
    %c0_37 = arith.constant 0 : index
    %22 = vector.load %arg6[%c0_36, %c0_37] : memref<1x8xf32, #tpu.memory_space<vmem>>, vector<1x8xf32>
    %23 = vector.broadcast %22 : vector<1x8xf32> to vector<64x8xf32>
    %24 = arith.addf %21, %23 : vector<64x8xf32>
    %cst_38 = arith.constant 0.000000e+00 : f32
    %25 = vector.broadcast %cst_38 : f32 to vector<64x8xf32>
    %26 = arith.maximumf %24, %25 : vector<64x8xf32>
    %27 = vector.shape_cast %26 : vector<64x8xf32> to vector<8x8x8xf32>
    %cst_39 = arith.constant 0.000000e+00 : f32
    %28 = vector.broadcast %cst_39 : f32 to vector<1x8x8xf32>
    %29 = tpu.concatenate %28, %27, %28 in 0 : vector<1x8x8xf32>, vector<8x8x8xf32>, vector<1x8x8xf32> -> vector<10x8x8xf32>
    %30 = tpu.iota {dimensions = array<i32: 1>} : vector<8x8x8xi32>
    %c1_i32 = arith.constant 1 : i32
    %31 = vector.broadcast %c1_i32 : i32 to vector<8x8x8xi32>
    %32 = arith.cmpi sge, %30, %31 : vector<8x8x8xi32>
    %c6_i32 = arith.constant 6 : i32
    %33 = vector.broadcast %c6_i32 : i32 to vector<8x8x8xi32>
    %34 = arith.cmpi sle, %30, %33 : vector<8x8x8xi32>
    %cst_40 = arith.constant 0.000000e+00 : f32
    %35 = vector.broadcast %cst_40 : f32 to vector<8x8x8xf32>
    %36 = vector.extract_strided_slice %29 {offsets = [0, 0, 0], sizes = [8, 8, 8], strides = [1, 1, 1]} : vector<10x8x8xf32> to vector<8x8x8xf32>
    %c1_i32_41 = arith.constant 1 : i32
    %37 = tpu.dynamic_rotate %36 by %c1_i32_41 dim 1 : vector<8x8x8xf32>, i32 -> vector<8x8x8xf32>
    %38 = arith.select %32, %37, %35 : vector<8x8x8xi1>, vector<8x8x8xf32>
    %39 = arith.truncf %38 : vector<8x8x8xf32> to vector<8x8x8xbf16>
    %40 = arith.truncf %36 : vector<8x8x8xf32> to vector<8x8x8xbf16>
    %c7_i32 = arith.constant 7 : i32
    %41 = tpu.dynamic_rotate %36 by %c7_i32 dim 1 : vector<8x8x8xf32>, i32 -> vector<8x8x8xf32>
    %42 = arith.select %34, %41, %35 : vector<8x8x8xi1>, vector<8x8x8xf32>
    %43 = arith.truncf %42 : vector<8x8x8xf32> to vector<8x8x8xbf16>
    %44 = vector.extract_strided_slice %29 {offsets = [1, 0, 0], sizes = [8, 8, 8], strides = [1, 1, 1]} : vector<10x8x8xf32> to vector<8x8x8xf32>
    %c1_i32_42 = arith.constant 1 : i32
    %45 = tpu.dynamic_rotate %44 by %c1_i32_42 dim 1 : vector<8x8x8xf32>, i32 -> vector<8x8x8xf32>
    %46 = arith.select %32, %45, %35 : vector<8x8x8xi1>, vector<8x8x8xf32>
    %47 = arith.truncf %46 : vector<8x8x8xf32> to vector<8x8x8xbf16>
    %48 = arith.truncf %44 : vector<8x8x8xf32> to vector<8x8x8xbf16>
    %c7_i32_43 = arith.constant 7 : i32
    %49 = tpu.dynamic_rotate %44 by %c7_i32_43 dim 1 : vector<8x8x8xf32>, i32 -> vector<8x8x8xf32>
    %50 = arith.select %34, %49, %35 : vector<8x8x8xi1>, vector<8x8x8xf32>
    %51 = arith.truncf %50 : vector<8x8x8xf32> to vector<8x8x8xbf16>
    %52 = vector.extract_strided_slice %29 {offsets = [2, 0, 0], sizes = [8, 8, 8], strides = [1, 1, 1]} : vector<10x8x8xf32> to vector<8x8x8xf32>
    %c1_i32_44 = arith.constant 1 : i32
    %53 = tpu.dynamic_rotate %52 by %c1_i32_44 dim 1 : vector<8x8x8xf32>, i32 -> vector<8x8x8xf32>
    %54 = arith.select %32, %53, %35 : vector<8x8x8xi1>, vector<8x8x8xf32>
    %55 = arith.truncf %54 : vector<8x8x8xf32> to vector<8x8x8xbf16>
    %56 = arith.truncf %52 : vector<8x8x8xf32> to vector<8x8x8xbf16>
    %c7_i32_45 = arith.constant 7 : i32
    %57 = tpu.dynamic_rotate %52 by %c7_i32_45 dim 1 : vector<8x8x8xf32>, i32 -> vector<8x8x8xf32>
    %58 = arith.select %34, %57, %35 : vector<8x8x8xi1>, vector<8x8x8xf32>
    %59 = arith.truncf %58 : vector<8x8x8xf32> to vector<8x8x8xbf16>
    %60 = tpu.concatenate %39, %40, %43, %47, %48, %51, %55, %56, %59 in 2 : vector<8x8x8xbf16>, vector<8x8x8xbf16>, vector<8x8x8xbf16>, vector<8x8x8xbf16>, vector<8x8x8xbf16>, vector<8x8x8xbf16>, vector<8x8x8xbf16>, vector<8x8x8xbf16>, vector<8x8x8xbf16> -> vector<8x8x72xbf16>
    %61 = vector.shape_cast %60 : vector<8x8x72xbf16> to vector<64x72xbf16>
    %c0_46 = arith.constant 0 : index
    %c0_47 = arith.constant 0 : index
    %62 = vector.load %arg7[%c0_46, %c0_47] : memref<72x8xbf16, #tpu.memory_space<vmem>>, vector<72x8xbf16>
    %cst_48 = arith.constant dense<0.000000e+00> : vector<64x8xf32>
    %63 = tpu.matmul %61, %62, %cst_48 {dimension_numbers = #tpu.dot_dimension_numbers<[1], [0], [0], [1], [0, 0, 1, 1], [], []>} : vector<64x72xbf16>, vector<72x8xbf16>, vector<64x8xf32> -> vector<64x8xf32>
    %c0_49 = arith.constant 0 : index
    %c0_50 = arith.constant 0 : index
    %64 = vector.load %arg8[%c0_49, %c0_50] : memref<1x8xf32, #tpu.memory_space<vmem>>, vector<1x8xf32>
    %65 = vector.broadcast %64 : vector<1x8xf32> to vector<64x8xf32>
    %66 = arith.addf %63, %65 : vector<64x8xf32>
    %67 = vector.shape_cast %9 : vector<8x8x4xbf16> to vector<64x4xbf16>
    %c0_51 = arith.constant 0 : index
    %c0_52 = arith.constant 0 : index
    %68 = vector.load %arg9[%c0_51, %c0_52] : memref<4x8xbf16, #tpu.memory_space<vmem>>, vector<4x8xbf16>
    %cst_53 = arith.constant dense<0.000000e+00> : vector<64x8xf32>
    %69 = tpu.matmul %67, %68, %cst_53 {dimension_numbers = #tpu.dot_dimension_numbers<[1], [0], [0], [1], [0, 0, 1, 1], [], []>} : vector<64x4xbf16>, vector<4x8xbf16>, vector<64x8xf32> -> vector<64x8xf32>
    %c0_54 = arith.constant 0 : index
    %c0_55 = arith.constant 0 : index
    %70 = vector.load %arg10[%c0_54, %c0_55] : memref<1x8xf32, #tpu.memory_space<vmem>>, vector<1x8xf32>
    %71 = vector.broadcast %70 : vector<1x8xf32> to vector<64x8xf32>
    %72 = arith.addf %69, %71 : vector<64x8xf32>
    %73 = arith.addf %66, %72 : vector<64x8xf32>
    %cst_56 = arith.constant 0.000000e+00 : f32
    %74 = vector.broadcast %cst_56 : f32 to vector<64x8xf32>
    %75 = arith.maximumf %73, %74 : vector<64x8xf32>
    %c0_57 = arith.constant 0 : index
    %c0_58 = arith.constant 0 : index
    %c0_59 = arith.constant 0 : index
    %76 = vector.load %arg11[%c0_57, %c0_58, %c0_59] : memref<1x64x8xf32, #tpu.memory_space<vmem>>, vector<1x64x8xf32>
    %77 = vector.shape_cast %76 : vector<1x64x8xf32> to vector<64x8xf32>
    %78 = vector.shape_cast %75 : vector<64x8xf32> to vector<1x64x8xf32>
    tpu.vector_store %arg11[%c0_57, %c0_58, %c0_59], %78 {strides = array<i32>} : memref<1x64x8xf32, #tpu.memory_space<vmem>>, vector<1x64x8xf32>,
    return
  }
  func.func @transform_0(%arg0: i32) -> (i32, i32, i32, i32) {
    %c0_i32 = arith.constant 0 : i32
    %c0_i32_0 = arith.constant 0 : i32
    %c0_i32_1 = arith.constant 0 : i32
    %c0_i32_2 = arith.constant 0 : i32
    return %arg0, %c0_i32, %c0_i32_0, %c0_i32_1 : i32, i32, i32, i32
  }
  func.func @transform_1(%arg0: i32) -> (i32, i32, i32, i32) {
    %c0_i32 = arith.constant 0 : i32
    %c0_i32_0 = arith.constant 0 : i32
    %c0_i32_1 = arith.constant 0 : i32
    %c0_i32_2 = arith.constant 0 : i32
    return %arg0, %c0_i32, %c0_i32_0, %c0_i32_1 : i32, i32, i32, i32
  }
  func.func @transform_2(%arg0: i32) -> (i32, i32, i32, i32) {
    %c0_i32 = arith.constant 0 : i32
    %c0_i32_0 = arith.constant 0 : i32
    %c0_i32_1 = arith.constant 0 : i32
    %c0_i32_2 = arith.constant 0 : i32
    return %arg0, %c0_i32, %c0_i32_0, %c0_i32_1 : i32, i32, i32, i32
  }
  func.func @transform_3(%arg0: i32) -> (i32, i32, i32, i32) {
    %c0_i32 = arith.constant 0 : i32
    %c0_i32_0 = arith.constant 0 : i32
    %c0_i32_1 = arith.constant 0 : i32
    %c0_i32_2 = arith.constant 0 : i32
    return %arg0, %c0_i32, %c0_i32_0, %c0_i32_1 : i32, i32, i32, i32
  }
  func.func @transform_4(%arg0: i32) -> (i32, i32) {
    %c0_i32 = arith.constant 0 : i32
    %c0_i32_0 = arith.constant 0 : i32
    %c0_i32_1 = arith.constant 0 : i32
    return %c0_i32, %c0_i32_0 : i32, i32
  }
  func.func @transform_5(%arg0: i32) -> (i32, i32) {
    %c0_i32 = arith.constant 0 : i32
    %c0_i32_0 = arith.constant 0 : i32
    %c0_i32_1 = arith.constant 0 : i32
    return %c0_i32, %c0_i32_0 : i32, i32
  }
  func.func @transform_6(%arg0: i32) -> (i32, i32) {
    %c0_i32 = arith.constant 0 : i32
    %c0_i32_0 = arith.constant 0 : i32
    %c0_i32_1 = arith.constant 0 : i32
    return %c0_i32, %c0_i32_0 : i32, i32
  }
  func.func @transform_7(%arg0: i32) -> (i32, i32) {
    %c0_i32 = arith.constant 0 : i32
    %c0_i32_0 = arith.constant 0 : i32
    %c0_i32_1 = arith.constant 0 : i32
    return %c0_i32, %c0_i32_0 : i32, i32
  }
  func.func @transform_8(%arg0: i32) -> (i32, i32) {
    %c0_i32 = arith.constant 0 : i32
    %c0_i32_0 = arith.constant 0 : i32
    %c0_i32_1 = arith.constant 0 : i32
    return %c0_i32, %c0_i32_0 : i32, i32
  }
  func.func @transform_9(%arg0: i32) -> (i32, i32) {
    %c0_i32 = arith.constant 0 : i32
    %c0_i32_0 = arith.constant 0 : i32
    %c0_i32_1 = arith.constant 0 : i32
    return %c0_i32, %c0_i32_0 : i32, i32
  }
  func.func @transform_10(%arg0: i32) -> (i32, i32, i32) {
    %c0_i32 = arith.constant 0 : i32
    %c0_i32_0 = arith.constant 0 : i32
    %c0_i32_1 = arith.constant 0 : i32
    return %arg0, %c0_i32, %c0_i32_0 : i32, i32, i32
  }
}

</mosaic_0001>

<bundles_post_ra>
// kernel: tpu_custom_call.1
= control target key start
LH: loop header
LB: loop body
LE: loop exit
PB: predicated region body
PF: predicated region fallthrough
CT: control target
= control target key end

     0   :  { %s2369_s13 = smov 0   ;;  %s3016_s0 = inlined_call_operand.vmem [shape: bf16[2,9,9,4], index: 0, kind: input, shape index: {}]   ;;  %s3017_s1 = inlined_call_operand.vmem [shape: bf16[2,9,9,4], index: 1, kind: input, shape index: {}]   ;;  %s3018_s2 = inlined_call_operand.vmem [shape: bf16[2,9,9,4], index: 2, kind: input, shape index: {}]   ;;  %s3019_s3 = inlined_call_operand.vmem [shape: bf16[2,9,9,4], index: 3, kind: input, shape index: {}]   ;;  %s3020_s4 = inlined_call_operand.vmem [shape: bf16[36,8], index: 4, kind: input, shape index: {}]   ;;  %s3021_s5 = inlined_call_operand.vmem [shape: f32[1,8], index: 5, kind: input, shape index: {}]   ;;  %s3022_s6 = inlined_call_operand.vmem [shape: bf16[72,8], index: 6, kind: input, shape index: {}]   ;;  %s3023_s7 = inlined_call_operand.vmem [shape: f32[1,8], index: 7, kind: input, shape index: {}]   ;;  %s3024_s8 = inlined_call_operand.vmem [shape: bf16[4,8], index: 8, kind: input, shape index: {}]   ;;  %s3025_s9 = inlined_call_operand.vmem [shape: f32[1,8], index: 9, kind: input, shape index: {}]   ;;  %s3026_s10 = inlined_call_operand.vmem [shape: f32[2,64,8], index: 10, kind: output, shape index: {}]  }
   0x1 LB: > { %s1992_s14 = sadd.s32 4294967295, %s2299_s13   ;;  %p1996_p0 = scmp.ge.s32.totalorder %s2299_s13, 1  ;;  %s2299_s13 = sphi %s2369_s13, %s20_s13  }
   0x2   : > { %p342_p1 = scmp.lt.s32.totalorder %s2299_s13, 3 }
   0x4   : > { %p343_p2 = pnand %p1996_p0, %p342_p1 }
   0x5   : > { %p395_p3 = scmp.lt.s32.totalorder (!%p343_p2), %s1992_s14, 1  ;;  %s2301_s25 = smov (!%p343_p2), 4  }
   0x6   : > { %346 = sbr.rel (%p343_p2) target bundleno = 853 (0x355), region = 60  ;;  %s2302_s29 = smov (!%p343_p2), 12  }
   0x7   : > { %s2303_s30 = smov (!%p343_p2), 8   ;;  %s2304_s11 = smov (!%p343_p2), 16  }
   0x8   : > { %s2305_s12 = smov (!%p343_p2), 20   ;;  %s2307_s22 = smov (!%p343_p2), 28  }
   0x9   : > { %s2308_s27 = smov (!%p343_p2), 32  }
   0xb   : > { %s3028_s14 = smov (!%p395_p3, %s1992_s14), 1  ;;  %vm1203_vm0 = vcmask 1041408   ;;  %vm999_vm1 = vcmask 31744   ;;  %vm1024_vm2 = vcmask 64512   ;;  %vm1041_vm3 = vcmask 97280  }
   0xc   : > { %s2380_s15 = smul.u32 72, %s3028_s14  ;;  %vm1058_vm4 = vcmask 130048   ;;  %vm1075_vm5 = vcmask 162816   ;;  %vm1092_vm6 = vcmask 195584   ;;  %vm1109_vm7 = vcmask 228352  }
   0xd   : > { %vm1126_vm8 = vcmask 261120   ;;  %vm1190_vm9 = vcmask 293888   ;;  %vm1716_vm12 = vcmask 1043456   ;;  %vm1572_vm13 = vcmask 326656  }
   0xe   : > { %s2386_s18 = scalar_lea.vmem %s3017_s1, %s2380_s15  ;;  %s2393_s21 = scalar_lea.vmem %s3018_s2, %s2380_s15  ;;  %vm1589_vm14 = vcmask 392192   ;;  %vm1606_vm15 = vcmask 457728  }
   0xf   : > { %v2217_v0 = vld [vmem:[%s2386_s18 + $0x10] ss:$0 sps:$4 sm:$0xff]   ;;  %s2399_s24 = scalar_lea.vmem %s3016_s0, %s2380_s15  ;;  %v2218_v1 = vld [vmem:[%s2386_s18] ss:$0 sps:$4 sm:$0xff]   ;;  %v2219_v2 = vld [vmem:[%s2386_s18 + $0x18] ss:$0 sps:$4 sm:$0xff]   ;;  %s2434_s28 = scalar_lea.vmem %s3019_s3, %s2380_s15 }
  0x10   : > { %523 = vrot.lane.b32.xlu1 %v2217_v0, %s2301_s25  ;;  %519 = vrot.lane.b32.xlu0 %v2218_v1, %s2301_s25  ;;  %v2220_v3 = vld [vmem:[%s2386_s18 + $0x8] ss:$0 sps:$4 sm:$0xff]   ;;  %v445_v5 = vld [vmem:[%s2393_s21] sm:$0xf]  ;;  %s2306_s15 = smov 24  }
  0x11   : > { %v446_v4 = vld [vmem:[%s2393_s21 + $0x8] sm:$0xf]  ;;  %v438_v7 = vld [vmem:[%s2399_s24 + $0xc] sm:$0x1]  ;;  %v2413_v8 = vld [vmem:[%s2399_s24] sm:$0xf]  ;;  %v2043_v18 = vcombine.low %v445_v5, %v445_v5 }
  0x12   : > { %v2409_v6 = vld [vmem:[%s2399_s24 + $0x8] sm:$0xf]  ;;  %v437_v10 = vld [vmem:[%s2399_s24 + $0x4] sm:$0x1]  ;;  %v2418_v11 = vld [vmem:[%s2399_s24 + $0x18] sm:$0xf]  ;;  %v2044_v13 = vcombine.low %v446_v4, %v446_v4 }
  0x13   : > { %v2036_v9 = vcombine.low %v2409_v6, %v438_v7  ;;  %v440_v12 = vld [vmem:[%s2399_s24 + $0x1c] sm:$0x1]  ;;  %v2035_v14 = vcombine.low %v2413_v8, %v437_v10  ;;  %v2425_v16 = vld [vmem:[%s2399_s24 + $0x10] sm:$0xf]  ;;  %v439_v17 = vld [vmem:[%s2399_s24 + $0x14] sm:$0x1] }
  0x14   : > { %525 = vrot.lane.b32.xlu1 %v2219_v2, %s2301_s25  ;;  %v2038_v15 = vcombine.low %v2418_v11, %v440_v12  ;;  %521 = vrot.lane.b32.xlu0 %v2220_v3, %s2301_s25  ;;  %v2037_v21 = vcombine.low %v2425_v16, %v439_v17  ;;  %v2439_v33 = vld [vmem:[%s2434_s28 + $0x8] sm:$0xf]  ;;  %v2442_v34 = vld [vmem:[%s2434_s28] sm:$0xf] }
  0x15   : > { %v583_v19 = vshrl.u32 %v2036_v9, 16  ;;  %v585_v20 = vshll.u32 %v2036_v9, 16  ;;  %v576_v22 = vshrl.u32 %v2035_v14, 16  ;;  %v578_v23 = vshll.u32 %v2035_v14, 16  ;;  %v2447_v37 = vld [vmem:[%s2434_s28 + $0x18] sm:$0xf] }
  0x16   : > { %v599_v24 = vshll.u32 %v2038_v15, 16  ;;  %v592_v26 = vshll.u32 %v2037_v21, 16  ;;  %v597_v28 = vshrl.u32 %v2038_v15, 16  ;;  %v590_v31 = vshrl.u32 %v2037_v21, 16  ;;  %v2450_v38 = vld [vmem:[%s2434_s28 + $0x10] sm:$0xf] }
  0x17   : > { %v587_v25 = vrot.slane %v585_v20, 1  ;;  %v580_v27 = vrot.slane %v578_v23, 1  ;;  %v2118_v36 = vcombine.low %v2442_v34, %v2439_v33  ;;  %v2119_v39 = vcombine.low %v2450_v38, %v2447_v37  ;;  %v462_v41 = vld [vmem:[%s2393_s21 + $0xc] sm:$0x1]  ;;  %v448_v43 = vld [vmem:[%s2393_s21 + $0x18] sm:$0xf] }
  0x18   : > { %673 = vrot.lane.b32.xlu1 %v2044_v13, %s2302_s29  ;;  %v601_v29 = vrot.slane %v599_v24, 1  ;;  %671 = vrot.lane.b32.xlu0 %v2043_v18, %s2302_s29  ;;  %v594_v32 = vrot.slane %v592_v26, 1  ;;  %v461_v44 = vld [vmem:[%s2393_s21 + $0x4] sm:$0x1]  ;;  %v447_v45 = vld [vmem:[%s2393_s21 + $0x10] sm:$0xf]  ;;  %v2060_v46 = vcombine.low %v446_v4, %v462_v41  ;;  %v2046_v47 = vcombine.low %v448_v43, %v448_v43 }
  0x19   : > { %v588_v30 = vor.u32 %v587_v25, %v583_v19  ;;  %v581_v35 = vor.u32 %v580_v27, %v576_v22  ;;  %v2059_v48 = vcombine.low %v445_v5, %v461_v44  ;;  %v464_v49 = vld [vmem:[%s2393_s21 + $0x1c] sm:$0x1]  ;;  %v2045_v50 = vcombine.low %v447_v45, %v447_v45  ;;  %v463_v51 = vld [vmem:[%s2393_s21 + $0x14] sm:$0x1]  ;;  %v2479_v10 = vld [vmem:[%s2434_s28 + $0x28] sm:$0xf] }
  0x1a   : > { %v602_v40 = vor.u32 %v601_v29, %v597_v28  ;;  %v595_v42 = vor.u32 %v594_v32, %v590_v31  ;;  %v2062_v52 = vcombine.low %v448_v43, %v464_v49  ;;  %v2052_v53 = vcombine.low %v2439_v33, %v2439_v33  ;;  %v2482_v12 = vld [vmem:[%s2434_s28 + $0x20] sm:$0xf]  ;;  %v2488_v15 = vld [vmem:[%s2434_s28 + $0x38] sm:$0xf]  ;;  %v2491_v17 = vld [vmem:[%s2434_s28 + $0x30] sm:$0xf] }
  0x1b   : > { %v761_v54 = vshll.u32 %v2060_v46, 16  ;;  %v2061_v55 = vcombine.low %v447_v45, %v463_v51  ;;  %v2051_v56 = vcombine.low %v2442_v34, %v2442_v34  ;;  %v754_v57 = vshll.u32 %v2059_v48, 16  ;;  %v2004_v19 = vld [vmem:[%s2399_s24 + $0x10] sm:$0xf]  ;;  %v2003_v21 = vld [vmem:[%s2399_s24 + $0x8] sm:$0xf] }
  0x1c   : > { %633 = vrot.lane.b32.xlu1 %v588_v30, %s2303_s30  ;;  %631 = vrot.lane.b32.xlu0 %v581_v35, %s2303_s30  ;;  %v2054_v58 = vcombine.low %v2447_v37, %v2447_v37  ;;  %v759_v59 = vshrl.u32 %v2060_v46, 16  ;;  %v775_v61 = vshll.u32 %v2062_v52, 16  ;;  %v2053_v62 = vcombine.low %v2450_v38, %v2450_v38  ;;  %v2020_v22 = vld [vmem:[%s2399_s24 + $0x14] sm:$0x1]  ;;  %v2019_v24 = vld [vmem:[%s2399_s24 + $0xc] sm:$0x1] }
  0x1d   : > { %v763_v60 = vrot.slane %v761_v54, 1  ;;  %v752_v63 = vshrl.u32 %v2059_v48, 16  ;;  %v756_v0 = vrot.slane %v754_v57, 1  ;;  %v768_v1 = vshll.u32 %v2061_v55, 16  ;;  %v2006_v26 = vld [vmem:[%s2399_s24 + $0x20] sm:$0xf] }
  0x1e   : > { %v773_v3 = vshrl.u32 %v2062_v52, 16  ;;  %v777_v4 = vrot.slane %v775_v61, 1  ;;  %v766_v7 = vshrl.u32 %v2061_v55, 16  ;;  %v2120_v14 = vcombine.low %v2482_v12, %v2479_v10  ;;  %v2005_v27 = vld [vmem:[%s2399_s24 + $0x18] sm:$0xf]  ;;  %v2287_v51 = vld [vmem:[%s3020_s4] sm:$0xff]  }
  0x1f   : > { %v764_v2 = vor.u32 %v763_v60, %v759_v59  ;;  %v757_v5 = vor.u32 %v756_v0, %v752_v63  ;;  %v770_v9 = vrot.slane %v768_v1, 1  ;;  %v2121_v20 = vcombine.low %v2491_v17, %v2488_v15  ;;  %v2285_v32 = vld [vmem:[%s3020_s4 + $0x10] ss:$0 sps:$4 sm:$0x33]   ;;  %v2022_v43 = vld [vmem:[%s2399_s24 + $0x24] sm:$0x1] }
  0x20   : > { %637 = vrot.lane.b32.xlu1 %v602_v40, %s2303_s30  ;;  %635 = vrot.lane.b32.xlu0 %v595_v42, %s2303_s30  ;;  %v778_v13 = vor.u32 %v777_v4, %v773_v3  ;;  %v2068_v23 = vcombine.low %v2004_v19, %v2004_v19  ;;  %v2067_v25 = vcombine.low %v2003_v21, %v2003_v21  ;;  %v2247_v35 = vld [vmem:[%s2386_s18 + $0x10] ss:$0 sps:$4 sm:$0xff]   ;;  %v1205_v41 = vsel %vm1203_vm0, %v2285_v32, 0  ;;  %v2286_v42 = vld [vmem:[%s3020_s4 + $0x8] sm:$0xff]   ;;  %s2312_s28 = smov 40  }
  0x21   : > { %v771_v18 = vor.u32 %v770_v9, %v766_v7  ;;  %v2084_v28 = vcombine.low %v2004_v19, %v2020_v22  ;;  %v2070_v29 = vcombine.low %v2006_v26, %v2006_v26  ;;  %v2083_v30 = vcombine.low %v2003_v21, %v2019_v24  ;;  %2192 = vmatprep.subr.msk.bf16.mxu0 %vm1203_vm0, %v2285_v32  ;;  %v2248_v44 = vld [vmem:[%s2386_s18 + $0x8] ss:$0 sps:$4 sm:$0xff]   ;;  %v2021_v46 = vld [vmem:[%s2399_s24 + $0x1c] sm:$0x1]  ;;  %v2249_v48 = vld [vmem:[%s2386_s18 + $0x20] ss:$0 sps:$4 sm:$0xff]  }
  0x22   : > { %v2069_v31 = vcombine.low %v2005_v27, %v2005_v27  ;;  %2151 = vmatpush3.bf16.msra.mxu0 %v1205_v41  ;;  %v2085_v52 = vcombine.low %v2005_v27, %v2021_v46  ;;  %v2530_v60 = vld [vmem:[%s2399_s24 + $0x28] sm:$0xf]  ;;  %v442_v61 = vld [vmem:[%s2399_s24 + $0x2c] sm:$0x1]  ;;  %v441_v63 = vld [vmem:[%s2399_s24 + $0x24] sm:$0x1] }
  0x23   : > { %v937_v40 = vshll.u32 %v2084_v28, 16  ;;  %v930_v45 = vshll.u32 %v2083_v30, 16  ;;  %2152 = vmatprep.subr.bf16.mxu0 %v2286_v42  ;;  %v935_v49 = vshrl.u32 %v2084_v28, 16  ;;  %v928_v54 = vshrl.u32 %v2083_v30, 16  ;;  %v2251_v0 = vld [vmem:[%s2386_s18 + $0x28] ss:$0 sps:$4 sm:$0xff]  }
  0x24   : > { %677 = vrot.lane.b32.xlu1 %v2046_v47, %s2302_s29  ;;  %675 = vrot.lane.b32.xlu0 %v2045_v50, %s2302_s29  ;;  %v2086_v47 = vcombine.low %v2006_v26, %v2022_v43  ;;  %v944_v59 = vshll.u32 %v2085_v52, 16  ;;  %v2252_v1 = vld [vmem:[%s2386_s18 + $0x20] ss:$0 sps:$4 sm:$0xff]   ;;  %v2040_v4 = vcombine.low %v2530_v60, %v442_v61  ;;  %v2548_v19 = vld [vmem:[%s2399_s24 + $0x30] sm:$0xf] }
  0x25   : > { %v939_v50 = vrot.slane %v937_v40, 1  ;;  %v932_v55 = vrot.slane %v930_v45, 1  ;;  %v443_v21 = vld [vmem:[%s2399_s24 + $0x34] sm:$0x1]  ;;  %v2253_v28 = vld [vmem:[%s2386_s18 + $0x38] ss:$0 sps:$4 sm:$0xff]  }
  0x26   : > { %2153 = vmatpush3.bf16.msra.mxu0 %v2286_v42  ;;  %v951_v57 = vshll.u32 %v2086_v47, 16  ;;  %v946_v7 = vrot.slane %v944_v59, 1  ;;  %v2041_v27 = vcombine.low %v2548_v19, %v443_v21  ;;  %v2254_v32 = vld [vmem:[%s2386_s18 + $0x30] ss:$0 sps:$4 sm:$0xff]  }
  0x27   : > { %2154 = vmatprep.subr.bf16.mxu0 %v2287_v51 }
  0x28   : > { %713 = vrot.lane.b32.xlu1 %v2052_v53, %s2304_s11  ;;  %711 = vrot.lane.b32.xlu0 %v2051_v56, %s2304_s11  ;;  %v2250_v53 = vld [vmem:[%s2386_s18 + $0x18] ss:$0 sps:$4 sm:$0xff]   ;;  %v940_v56 = vor.u32 %v939_v50, %v935_v49  ;;  %v953_v3 = vrot.slane %v951_v57, 1  ;;  %v620_v41 = vshll.u32 %v2041_v27, 16  ;;  %v618_v46 = vshrl.u32 %v2041_v27, 16 }
  0x29   : > { %v450_v50 = vld [vmem:[%s2393_s21 + $0x28] sm:$0xf]  ;;  %v451_v57 = vld [vmem:[%s2393_s21 + $0x30] sm:$0xf] }
  0x2a   : > { %2155 = vmatpush3.bf16.msra.mxu0 %v2287_v51  ;;  %v449_v51 = vld [vmem:[%s2393_s21 + $0x20] sm:$0xf] }
  0x2c   : > { %717 = vrot.lane.b32.xlu1 %v2054_v58, %s2304_s11  ;;  %715 = vrot.lane.b32.xlu0 %v2053_v62, %s2304_s11  ;;  %v933_v58 = vor.u32 %v932_v55, %v928_v54  ;;  %v2534_v62 = vld [vmem:[%s2399_s24 + $0x20] sm:$0xf]  ;;  %v2047_v54 = vcombine.low %v449_v51, %v449_v51  ;;  %v452_v55 = vld [vmem:[%s2393_s21 + $0x38] sm:$0xf] }
  0x2d   : > { %v2039_v9 = vcombine.low %v2534_v62, %v441_v63  ;;  %v2050_v59 = vcombine.low %v452_v55, %v452_v55  ;;  %v468_v63 = vld [vmem:[%s2393_s21 + $0x3c] sm:$0x1] }
  0x2f   : > { %v606_v26 = vshll.u32 %v2039_v9, 16 }
  0x30   : > { %809 = vrot.lane.b32.xlu1 %v764_v2, %s2305_s12  ;;  %807 = vrot.lane.b32.xlu0 %v757_v5, %s2305_s12  ;;  %v949_v2 = vshrl.u32 %v2086_v47, 16  ;;  %v942_v5 = vshrl.u32 %v2085_v52, 16  ;;  %v622_v47 = vrot.slane %v620_v41, 1  ;;  %v2048_v52 = vcombine.low %v450_v50, %v450_v50 }
  0x31   : > { %v608_v40 = vrot.slane %v606_v26, 1 }
  0x32   : > { %v954_v22 = vor.u32 %v953_v3, %v949_v2  ;;  %v623_v49 = vor.u32 %v622_v47, %v618_v46  ;;  %v2066_v2 = vcombine.low %v452_v55, %v468_v63  ;;  %v2056_v3 = vcombine.low %v2479_v10, %v2479_v10  ;;  %v2010_v47 = vld [vmem:[%s2399_s24 + $0x40] sm:$0xf]  ;;  %v2025_v55 = vld [vmem:[%s2399_s24 + $0x3c] sm:$0x1] }
  0x34   : > { %813 = vrot.lane.b32.xlu1 %v778_v13, %s2305_s12  ;;  %811 = vrot.lane.b32.xlu0 %v771_v18, %s2305_s12  ;;  %v2544_v13 = vld [vmem:[%s2399_s24 + $0x38] sm:$0xf]  ;;  %v444_v18 = vld [vmem:[%s2399_s24 + $0x3c] sm:$0x1] }
  0x35   : > { %v2042_v24 = vcombine.low %v2544_v13, %v444_v18  ;;  %v2058_v18 = vcombine.low %v2488_v15, %v2488_v15 }
  0x37   : > { %v625_v43 = vshrl.u32 %v2042_v24, 16 }
  0x38   : > { %849 = vrot.lane.b32.xlu1 %v2068_v23, %s2306_s15  ;;  %847 = vrot.lane.b32.xlu0 %v2067_v25, %s2306_s15  ;;  %v613_v23 = vshll.u32 %v2040_v4, 16  ;;  %v947_v25 = vor.u32 %v946_v7, %v942_v5  ;;  %v2055_v7 = vcombine.low %v2482_v12, %v2482_v12 }
  0x3a   : > { %v615_v30 = vrot.slane %v613_v23, 1  ;;  %v803_v23 = vshll.u32 %v2066_v2, 16 }
  0x3c   : > { %853 = vrot.lane.b32.xlu1 %v2070_v29, %s2306_s15  ;;  %851 = vrot.lane.b32.xlu0 %v2069_v31, %s2306_s15  ;;  %v611_v29 = vshrl.u32 %v2040_v4, 16  ;;  %v627_v31 = vshll.u32 %v2042_v24, 16  ;;  %v2057_v24 = vcombine.low %v2491_v17, %v2491_v17 }
  0x3e   : > { %v616_v42 = vor.u32 %v615_v30, %v611_v29  ;;  %v801_v29 = vshrl.u32 %v2066_v2, 16  ;;  %v805_v30 = vrot.slane %v803_v23, 1 }
  0x40   : > { %889 = vrot.lane.b32.xlu1 %v2247_v35, %s2307_s22  ;;  %887 = vrot.lane.b32.xlu0 %v2248_v44, %s2307_s22  ;;  %v604_v35 = vshrl.u32 %v2039_v9, 16  ;;  %v629_v44 = vrot.slane %v627_v31, 1 }
  0x42   : > { %v609_v45 = vor.u32 %v608_v40, %v604_v35  ;;  %v806_v40 = vor.u32 %v805_v30, %v801_v29 }
  0x44   : > { %893 = vrot.lane.b32.xlu1 %v2249_v48, %s2307_s22  ;;  %891 = vrot.lane.b32.xlu0 %v2250_v53, %s2307_s22  ;;  %v630_v48 = vor.u32 %v629_v44, %v625_v43  ;;  %v466_v53 = vld [vmem:[%s2393_s21 + $0x2c] sm:$0x1]  ;;  %v2007_v43 = vld [vmem:[%s2399_s24 + $0x28] sm:$0xf] }
  0x45   : > { %v2071_v46 = vcombine.low %v2007_v43, %v2007_v43 }
  0x48   : > { %985 = vrot.lane.b32.xlu1 %v940_v56, %s2308_s27  ;;  %983 = vrot.lane.b32.xlu0 %v933_v58, %s2308_s27  ;;  %v465_v56 = vld [vmem:[%s2393_s21 + $0x24] sm:$0x1]  ;;  %v2064_v58 = vcombine.low %v450_v50, %v466_v53 }
  0x49   : > { %v2063_v61 = vcombine.low %v449_v51, %v465_v56  ;;  %v2074_v51 = vcombine.low %v2010_v47, %v2010_v47  ;;  %v2026_v53 = vld [vmem:[%s2399_s24 + $0x44] sm:$0x1] }
  0x4a   : > { %v789_v4 = vshll.u32 %v2064_v58, 16  ;;  %v787_v21 = vshrl.u32 %v2064_v58, 16  ;;  %v2090_v56 = vcombine.low %v2010_v47, %v2026_v53 }
  0x4b   : > { %v782_v9 = vshll.u32 %v2063_v61, 16 }
  0x4c   : > { %529 = vrot.lane.b32.xlu1 %v2251_v0, %s2301_s25  ;;  %527 = vrot.lane.b32.xlu0 %v2252_v1, %s2301_s25  ;;  %v2049_v0 = vcombine.low %v451_v57, %v451_v57  ;;  %v467_v1 = vld [vmem:[%s2393_s21 + $0x34] sm:$0x1]  ;;  %v977_v23 = vshrl.u32 %v2090_v56, 16  ;;  %s2311_s21 = smov 56  }
  0x4d   : > { %v2065_v5 = vcombine.low %v451_v57, %v467_v1  ;;  %v784_v26 = vrot.slane %v782_v9, 1  ;;  %v2281_v57 = vld [vmem:[%s2386_s18 + $0x30] ss:$0 sps:$4 sm:$0xff]  }
  0x4f   : > { %v796_v27 = vshll.u32 %v2065_v5, 16 }
  0x50   : > { %989 = vrot.lane.b32.xlu1 %v954_v22, %s2308_s27  ;;  %987 = vrot.lane.b32.xlu0 %v947_v25, %s2308_s27  ;;  %v791_v22 = vrot.slane %v789_v4, 1  ;;  %v780_v25 = vshrl.u32 %v2063_v61, 16  ;;  %v2282_v61 = vld [vmem:[%s2386_s18 + $0x28] ss:$0 sps:$4 sm:$0xff]   ;;  %v2284_v4 = vld [vmem:[%s2386_s18 + $0x38] ss:$0 sps:$4 sm:$0xff]  }
  0x51   : > { %v798_v35 = vrot.slane %v796_v27, 1 }
  0x52   : > { %v785_v31 = vor.u32 %v784_v26, %v780_v25 }
  0x54   : > { %533 = vrot.lane.b32.xlu1 %v2253_v28, %s2301_s25  ;;  %531 = vrot.lane.b32.xlu0 %v2254_v32, %s2301_s25  ;;  %v792_v28 = vor.u32 %v791_v22, %v787_v21  ;;  %v794_v32 = vshrl.u32 %v2065_v5, 16 }
  0x56   : > { %v799_v41 = vor.u32 %v798_v35, %v794_v32 }
  0x58   : > { %641 = vrot.lane.b32.xlu1 %v616_v42, %s2303_s30  ;;  %639 = vrot.lane.b32.xlu0 %v609_v45, %s2303_s30  ;;  %v2008_v42 = vld [vmem:[%s2399_s24 + $0x30] sm:$0xf]  ;;  %v2024_v45 = vld [vmem:[%s2399_s24 + $0x34] sm:$0x1] }
  0x59   : > { %v2072_v44 = vcombine.low %v2008_v42, %v2008_v42  ;;  %v2088_v50 = vcombine.low %v2008_v42, %v2024_v45  ;;  %v2309_v42 = vmov 0.0|0.0  }
  0x5b   : > { %v965_v58 = vshll.u32 %v2088_v50, 16  ;;  %v963_v1 = vshrl.u32 %v2088_v50, 16 }
  0x5c   : > { %645 = vrot.lane.b32.xlu1 %v630_v48, %s2303_s30  ;;  %643 = vrot.lane.b32.xlu0 %v623_v49, %s2303_s30  ;;  %v2023_v48 = vld [vmem:[%s2399_s24 + $0x2c] sm:$0x1]  ;;  %v2009_v49 = vld [vmem:[%s2399_s24 + $0x38] sm:$0xf] }
  0x5d   : > { %v967_v2 = vrot.slane %v965_v58, 1 }
  0x5f   : > { %v968_v22 = vor.u32 %v967_v2, %v963_v1 }
  0x60   : > { %681 = vrot.lane.b32.xlu1 %v2048_v52, %s2302_s29  ;;  %679 = vrot.lane.b32.xlu0 %v2047_v54, %s2302_s29  ;;  %v2087_v52 = vcombine.low %v2007_v43, %v2023_v48  ;;  %v2073_v54 = vcombine.low %v2009_v49, %v2009_v49 }
  0x62   : > { %v958_v63 = vshll.u32 %v2087_v52, 16  ;;  %v956_v5 = vshrl.u32 %v2087_v52, 16 }
  0x64   : > { %685 = vrot.lane.b32.xlu1 %v2050_v59, %s2302_s29  ;;  %683 = vrot.lane.b32.xlu0 %v2049_v0, %s2302_s29  ;;  %v2089_v59 = vcombine.low %v2009_v49, %v2025_v55  ;;  %v2283_v0 = vld [vmem:[%s2386_s18 + $0x40] ss:$0 sps:$4 sm:$0xff]   ;;  %s2310_s18 = smov 48   ;;  %s2313_s29 = smov 64  }
  0x66   : > { %v972_v9 = vshll.u32 %v2089_v59, 16  ;;  %v970_v26 = vshrl.u32 %v2089_v59, 16 }
  0x68   : > { %721 = vrot.lane.b32.xlu1 %v2056_v3, %s2304_s11  ;;  %719 = vrot.lane.b32.xlu0 %v2055_v7, %s2304_s11  ;;  %v979_v3 = vshll.u32 %v2090_v56, 16  ;;  %v960_v7 = vrot.slane %v958_v63, 1  ;;  %v974_v27 = vrot.slane %v972_v9, 1 }
  0x6a   : > { %v961_v25 = vor.u32 %v960_v7, %v956_v5 }
  0x6c   : > { %725 = vrot.lane.b32.xlu1 %v2058_v18, %s2304_s11  ;;  %723 = vrot.lane.b32.xlu0 %v2057_v24, %s2304_s11  ;;  %v981_v24 = vrot.slane %v979_v3, 1 }
  0x6e   : > { %v982_v30 = vor.u32 %v981_v24, %v977_v23 }
  0x70   : > { %817 = vrot.lane.b32.xlu1 %v792_v28, %s2305_s12  ;;  %815 = vrot.lane.b32.xlu0 %v785_v31, %s2305_s12  ;;  %v975_v31 = vor.u32 %v974_v27, %v970_v26 }
  0x74   : > { %821 = vrot.lane.b32.xlu1 %v806_v40, %s2305_s12  ;;  %819 = vrot.lane.b32.xlu0 %v799_v41, %s2305_s12 }
  0x78   : > { %857 = vrot.lane.b32.xlu1 %v2072_v44, %s2306_s15  ;;  %855 = vrot.lane.b32.xlu0 %v2071_v46, %s2306_s15 }
  0x7c   : > { %861 = vrot.lane.b32.xlu1 %v2074_v51, %s2306_s15  ;;  %859 = vrot.lane.b32.xlu0 %v2073_v54, %s2306_s15 }
  0x80   : > { %897 = vrot.lane.b32.xlu1 %v2281_v57, %s2307_s22  ;;  %895 = vrot.lane.b32.xlu0 %v2282_v61, %s2307_s22 }
  0x82   : > { %v2611_v18 = vpop.permute.xlu1 %523  ;;  %v520_v21 = vpop.permute.xlu0 %519 }
  0x83   : > { %v1002_v63 = vsel %vm999_vm1, %v2413_v8, %v520_v21 }
  0x84   : > { %901 = vrot.lane.b32.xlu1 %v2283_v0, %s2307_s22  ;;  %899 = vrot.lane.b32.xlu0 %v2284_v4, %s2307_s22 }
  0x86   : > { %v2615_v28 = vpop.permute.xlu1 %525  ;;  %v522_v29 = vpop.permute.xlu0 %521 }
  0x87   : > { %v1005_v59 = vsel %vm999_vm1, %v2409_v6, %v522_v29 }
  0x88   : > { %993 = vrot.lane.b32.xlu1 %v968_v22, %s2308_s27  ;;  %991 = vrot.lane.b32.xlu0 %v961_v25, %s2308_s27 }
  0x8a   : > { %v674_v32 = vpop.permute.xlu1 %673  ;;  %v672_v35 = vpop.permute.xlu0 %671 }
  0x8c   : > { %997 = vrot.lane.b32.xlu1 %v982_v30, %s2308_s27  ;;  %995 = vrot.lane.b32.xlu0 %v975_v31, %s2308_s27  ;;  %v1011_v30 = vsel %vm999_vm1, %v2418_v11, %v2615_v28 }
  0x8e   : > { %v634_v40 = vpop.permute.xlu1 %633  ;;  %v632_v41 = vpop.permute.xlu0 %631 }
  0x8f   : > { %v1028_v0 = vsel %vm1024_vm2, %v1005_v59, %v634_v40  ;;  %v1026_v2 = vsel %vm1024_vm2, %v1002_v63, %v632_v41 }
  0x90   : > { %1466 = vrot.lane.b32.xlu1 %v2309_v42, %s2310_s18  ;;  %1353 = vrot.lane.b32.xlu0 %v2309_v42, %s2303_s30  ;;  %v1045_v3 = vsel %vm1041_vm3, %v1028_v0, %v674_v32  ;;  %v1043_v6 = vsel %vm1041_vm3, %v1026_v2, %v672_v35  ;;  %v1008_v32 = vsel %vm999_vm1, %v2425_v16, %v2611_v18 }
  0x92   : > { %v638_v43 = vpop.permute.xlu1 %637  ;;  %v636_v44 = vpop.permute.xlu0 %635 }
  0x93   : > { %v1032_v35 = vsel %vm1024_vm2, %v1011_v30, %v638_v43  ;;  %v1030_v41 = vsel %vm1024_vm2, %v1008_v32, %v636_v44 }
  0x94   : > { %1377 = vrot.lane.b32.xlu0 %v2309_v42, %s2304_s11  ;;  %1482 = vrot.lane.b32.xlu1 %v2309_v42, %s2311_s21 }
  0x96   : > { %v678_v45 = vpop.permute.xlu1 %677  ;;  %v676_v46 = vpop.permute.xlu0 %675 }
  0x9a   : > { %v714_v47 = vpop.permute.xlu1 %713  ;;  %v712_v48 = vpop.permute.xlu0 %711 }
  0x9b   : > { %v1062_v5 = vsel %vm1058_vm4, %v1045_v3, %v714_v47  ;;  %v1060_v8 = vsel %vm1058_vm4, %v1043_v6, %v712_v48  ;;  %v1049_v47 = vsel %vm1041_vm3, %v1032_v35, %v678_v45 }
  0x9e   : > { %v718_v49 = vpop.permute.xlu1 %717  ;;  %v716_v50 = vpop.permute.xlu0 %715 }
  0xa2   : > { %v810_v51 = vpop.permute.xlu1 %809  ;;  %v808_v52 = vpop.permute.xlu0 %807 }
  0xa3   : > { %v1079_v9 = vsel %vm1075_vm5, %v1062_v5, %v810_v51  ;;  %v1077_v21 = vsel %vm1075_vm5, %v1060_v8, %v808_v52  ;;  %v1047_v51 = vsel %vm1041_vm3, %v1030_v41, %v676_v46  ;;  %v1066_v52 = vsel %vm1058_vm4, %v1049_v47, %v718_v49 }
  0xa4   : > { %v1064_v28 = vsel %vm1058_vm4, %v1047_v51, %v716_v50 }
  0xa6   : > { %v814_v53 = vpop.permute.xlu1 %813  ;;  %v812_v54 = vpop.permute.xlu0 %811 }
  0xa7   : > { %v1081_v16 = vsel %vm1075_vm5, %v1064_v28, %v812_v54 }
  0xaa   : > { %v850_v55 = vpop.permute.xlu1 %849  ;;  %v848_v56 = vpop.permute.xlu0 %847 }
  0xab   : > { %v1096_v22 = vsel %vm1092_vm6, %v1079_v9, %v850_v55  ;;  %v1094_v23 = vsel %vm1092_vm6, %v1077_v21, %v848_v56  ;;  %v1083_v55 = vsel %vm1075_vm5, %v1066_v52, %v814_v53 }
  0xae   : > { %v854_v57 = vpop.permute.xlu1 %853  ;;  %v852_v58 = vpop.permute.xlu0 %851 }
  0xaf   : > { %v1100_v18 = vsel %vm1092_vm6, %v1083_v55, %v854_v57  ;;  %v1098_v43 = vsel %vm1092_vm6, %v1081_v16, %v852_v58 }
  0xb2   : > { %v890_v61 = vpop.permute.xlu1 %889  ;;  %v888_v1 = vpop.permute.xlu0 %887 }
  0xb3   : > { %v1113_v24 = vsel %vm1109_vm7, %v1096_v22, %v890_v61  ;;  %v1111_v26 = vsel %vm1109_vm7, %v1094_v23, %v888_v1 }
  0xb6   : > { %v894_v4 = vpop.permute.xlu1 %893  ;;  %v892_v7 = vpop.permute.xlu0 %891 }
  0xb7   : > { %v1117_v44 = vsel %vm1109_vm7, %v1100_v18, %v894_v4  ;;  %v1115_v46 = vsel %vm1109_vm7, %v1098_v43, %v892_v7 }
  0xba   : > { %v986_v25 = vpop.permute.xlu1 %985  ;;  %v984_v29 = vpop.permute.xlu0 %983 }
  0xbb   : > { %v1130_v27 = vsel %vm1126_vm8, %v1113_v24, %v986_v25  ;;  %v1128_v31 = vsel %vm1126_vm8, %v1111_v26, %v984_v29 }
  0xbc   : > { %v2092_v40 = vcombine.low %v1128_v31, %v1130_v27 }
  0xbe   : > { %v530_v48 = vpop.permute.xlu1 %529  ;;  %2156 = vmatprep.mubr.msk.bf16.mxu0 %vm1190_vm9, %v2092_v40  ;;  %v528_v11 = vpop.permute.xlu0 %527 }
  0xbf   : > { %v1017_v30 = vsel %vm999_vm1, %v2530_v60, %v530_v48  ;;  %v1014_v31 = vsel %vm999_vm1, %v2534_v62, %v528_v11 }
  0xc2   : > { %v990_v45 = vpop.permute.xlu1 %989  ;;  %v988_v56 = vpop.permute.xlu0 %987 }
  0xc3   : > { %v1134_v49 = vsel %vm1126_vm8, %v1117_v44, %v990_v45  ;;  %v1132_v59 = vsel %vm1126_vm8, %v1115_v46, %v988_v56 }
  0xc4   : > { %v2093_v61 = vcombine.low %v1132_v59, %v1134_v49 }
  0xc6   : > { %v534_v50 = vpop.permute.xlu1 %533  ;;  %2157 = vmatmul.mubr.msk.bf16.vlgmr.msra.gmra.mxu0 %vm1190_vm9, %v2093_v61  ;;  %v532_v53 = vpop.permute.xlu0 %531 }
  0xc7   : > { %v1023_v28 = vsel %vm999_vm1, %v2544_v13, %v534_v50  ;;  %v1020_v62 = vsel %vm999_vm1, %v2548_v19, %v532_v53 }
  0xca   : > { %v642_v54 = vpop.permute.xlu1 %641  ;;  %v640_v63 = vpop.permute.xlu0 %639 }
  0xcb   : > { %v1036_v32 = vsel %vm1024_vm2, %v1017_v30, %v642_v54  ;;  %v1034_v35 = vsel %vm1024_vm2, %v1014_v31, %v640_v63 }
  0xce   : > { %v646_v57 = vpop.permute.xlu1 %645  ;;  %v644_v0 = vpop.permute.xlu0 %643 }
  0xcf   : > { %v1040_v11 = vsel %vm1024_vm2, %v1023_v28, %v646_v57  ;;  %v1038_v18 = vsel %vm1024_vm2, %v1020_v62, %v644_v0 }
  0xd2   : > { %v682_v58 = vpop.permute.xlu1 %681  ;;  %v680_v1 = vpop.permute.xlu0 %679 }
  0xd3   : > { %v1053_v40 = vsel %vm1041_vm3, %v1036_v32, %v682_v58  ;;  %v1051_v47 = vsel %vm1041_vm3, %v1034_v35, %v680_v1 }
  0xd6   : > { %v686_v2 = vpop.permute.xlu1 %685  ;;  %v684_v3 = vpop.permute.xlu0 %683 }
  0xd7   : > { %v1057_v43 = vsel %vm1041_vm3, %v1040_v11, %v686_v2  ;;  %v1055_v46 = vsel %vm1041_vm3, %v1038_v18, %v684_v3 }
  0xda   : > { %v722_v4 = vpop.permute.xlu1 %721  ;;  %v720_v5 = vpop.permute.xlu0 %719 }
  0xdb   : > { %v1070_v51 = vsel %vm1058_vm4, %v1053_v40, %v722_v4  ;;  %v1068_v60 = vsel %vm1058_vm4, %v1051_v47, %v720_v5 }
  0xde   : > { %v726_v6 = vpop.permute.xlu1 %725  ;;  %v724_v7 = vpop.permute.xlu0 %723 }
  0xdf   : > { %v1074_v49 = vsel %vm1058_vm4, %v1057_v43, %v726_v6  ;;  %v1072_v61 = vsel %vm1058_vm4, %v1055_v46, %v724_v7  ;;  %v2714_v7 = vld [vmem:[%s3021_s5] ss:$0 sm:$0xff] }
  0xe2   : > { %v818_v8 = vpop.permute.xlu1 %817  ;;  %v816_v9 = vpop.permute.xlu0 %815 }
  0xe3   : > { %v1087_v48 = vsel %vm1075_vm5, %v1070_v51, %v818_v8  ;;  %v1085_v55 = vsel %vm1075_vm5, %v1068_v60, %v816_v9  ;;  %v1280_v9 = vlaneseq }
  0xe5   : > { %v2718_v33 = vshrl.u32 %v1280_v9, 7 }
  0xe6   : > { %v822_v21 = vpop.permute.xlu1 %821  ;;  %v820_v22 = vpop.permute.xlu0 %819 }
  0xe7   : > { %v1091_v50 = vsel %vm1075_vm5, %v1074_v49, %v822_v21  ;;  %v1089_v54 = vsel %vm1075_vm5, %v1072_v61, %v820_v22  ;;  %vm1282_vm10 = vcmp.ge.s32.totalorder %v2718_v33, 1  ;;  %vm1283_vm11 = vcmp.le.s32.totalorder %v2718_v33, 6 }
  0xea   : > { %v858_v23 = vpop.permute.xlu1 %857  ;;  %v856_v24 = vpop.permute.xlu0 %855 }
  0xeb   : > { %v1104_v16 = vsel %vm1092_vm6, %v1087_v48, %v858_v23  ;;  %v1102_v44 = vsel %vm1092_vm6, %v1085_v55, %v856_v24 }
  0xee   : > { %v862_v25 = vpop.permute.xlu1 %861  ;;  %v860_v26 = vpop.permute.xlu0 %859 }
  0xef   : > { %v1108_v63 = vsel %vm1092_vm6, %v1091_v50, %v862_v25  ;;  %v1106_v0 = vsel %vm1092_vm6, %v1089_v54, %v860_v26 }
  0xf2   : > { %v898_v27 = vpop.permute.xlu1 %897  ;;  %v896_v29 = vpop.permute.xlu0 %895 }
  0xf3   : > { %v1121_v13 = vsel %vm1109_vm7, %v1104_v16, %v898_v27  ;;  %v1119_v19 = vsel %vm1109_vm7, %v1102_v44, %v896_v29 }
  0xf6   : > { %v902_v41 = vpop.permute.xlu1 %901  ;;  %v900_v52 = vpop.permute.xlu0 %899 }
  0xf7   : > { %v1125_v58 = vsel %vm1109_vm7, %v1108_v63, %v902_v41  ;;  %v1123_v2 = vsel %vm1109_vm7, %v1106_v0, %v900_v52 }
  0xfa   : > { %v994_v45 = vpop.permute.xlu1 %993  ;;  %v992_v59 = vpop.permute.xlu0 %991 }
  0xfb   : > { %v1138_v56 = vsel %vm1126_vm8, %v1121_v13, %v994_v45  ;;  %v1136_v53 = vsel %vm1126_vm8, %v1119_v19, %v992_v59 }
  0xfc   : > { %v2094_v57 = vcombine.low %v1136_v53, %v1138_v56 }
  0xfe   : > { %v998_v1 = vpop.permute.xlu1 %997  ;;  %2160 = vmatprep.mubr.msk.bf16.mxu0 %vm1190_vm9, %v2094_v57  ;;  %v996_v4 = vpop.permute.xlu0 %995 }
  0xff   : > { %v1142_v3 = vsel %vm1126_vm8, %v1125_v58, %v998_v1  ;;  %v1140_v5 = vsel %vm1126_vm8, %v1123_v2, %v996_v4  ;;  %v2288_v4 = vld [vmem:[%s3022_s6 + $0x20] ss:$0 sps:$4 sm:$0xff]  }
 0x100   : > { %v2095_v6 = vcombine.low %v1140_v5, %v1142_v3  ;;  %2193 = vmatprep.subr.msk.bf16.mxu1 %vm1716_vm12, %v2288_v4 }
 0x102   : > { %2161 = vmatmul.mubr.msk.bf16.gmra.mxu0 %vm1190_vm9, %v2095_v6  ;;  %v1718_v6 = vsel %vm1716_vm12, %v2288_v4, 0 }
 0x103   : > { %2184 = vmatprep.mubr.msk.bf16.mxu0 %vm999_vm1, %v2118_v36  ;;  %2165 = vmatpush3.bf16.msra.mxu1 %v1718_v6 }
 0x186   : > { %v2158_v8 = vpop.f32.mrf.mxu0 }
 0x187   : > { %v1250_v21 = vadd.f32 %v2158_v8, %v2714_v7  ;;  %v2289_v8 = vld [vmem:[%s3022_s6 + $0x18] sm:$0xff]  }
 0x188   : > { %v1241_v22 = vpop.f32.mrf.mxu0  ;;  %2166 = vmatprep.subr.bf16.mxu1 %v2289_v8 }
 0x189   : > { %v1274_v23 = vmax.f32 %v1250_v21, 0.0  ;;  %v1242_v24 = vadd.f32 %v2714_v7, %v1241_v22  ;;  %2167 = vmatpush3.bf16.msra.mxu1 %v2289_v8 }
 0x18a   : > { %v2159_v29 = vpop.f32.mrf.mxu0 }
 0x18b   : > { %v1272_v34 = vmax.f32 %v1242_v24, 0.0  ;;  %v1310_v36 = vpack.c.bf16 %v1274_v23, %v1274_v23  ;;  %v1286_v25 = vrot.slane %v1274_v23, 7  ;;  %v1317_v27 = vrot.slane %v1274_v23, 1 }
 0x18c   : > { %v1253_v31 = vadd.f32 %v2159_v29, %v2714_v7  ;;  %v1244_v28 = vpop.f32.mrf.mxu0  ;;  %v2291_v29 = vld [vmem:[%s3022_s6 + $0x8] sm:$0xff]  }
 0x18d   : > { %1422 = vrot.lane.b32.xlu0 %v1310_v36, %s2308_s27  ;;  %1359 = vrot.lane.b32.xlu1 %v1310_v36, %s2303_s30  ;;  %v1308_v26 = vpack.c.bf16 %v1272_v34, %v1272_v34  ;;  %v1294_v30 = vsel %vm1282_vm10, %v1286_v25, 0.0  ;;  %v1325_v35 = vsel %vm1283_vm11, %v1317_v27, 0.0  ;;  %v1284_v51 = vrot.slane %v1272_v34, 7 }
 0x18e   : > { %v2729_v32 = vpack.c.bf16 %v1294_v30, %v1294_v30  ;;  %v1275_v40 = vmax.f32 %v1253_v31, 0.0  ;;  %v1333_v41 = vpack.c.bf16 %v1325_v35, %v1325_v35  ;;  %v1315_v52 = vrot.slane %v1272_v34, 1 }
 0x18f   : > { %v1292_v60 = vsel %vm1282_vm10, %v1284_v51, 0.0  ;;  %v1245_v48 = vadd.f32 %v2714_v7, %v1244_v28 }
 0x190   : > { %v1311_v47 = vpack.c.bf16 %v1275_v40, %v1275_v40  ;;  %v2746_v62 = vpack.c.bf16 %v1292_v60, %v1292_v60  ;;  %v1323_v11 = vsel %vm1283_vm11, %v1315_v52, 0.0  ;;  %v1287_v18 = vrot.slane %v1275_v40, 7 }
 0x191   : > { %1470 = vrot.lane.b32.xlu1 %v1310_v36, %s2311_s21  ;;  %1418 = vrot.lane.b32.xlu0 %v1308_v26, %s2308_s27  ;;  %v1273_v55 = vmax.f32 %v1245_v48, 0.0  ;;  %v1331_v16 = vpack.c.bf16 %v1323_v11, %v1323_v11  ;;  %v1318_v44 = vrot.slane %v1275_v40, 1  ;;  %v2290_v36 = vld [vmem:[%s3022_s6 + $0x10] sm:$0xff]  }
 0x192   : > { %v1295_v13 = vsel %vm1282_vm10, %v1287_v18, 0.0  ;;  %2168 = vmatprep.subr.bf16.mxu1 %v2290_v36  ;;  %v1354_v18 = vpop.permute.xlu0 %1353 }
 0x193   : > { %v1309_v43 = vpack.c.bf16 %v1273_v55, %v1273_v55  ;;  %v2759_v45 = vpack.c.bf16 %v1295_v13, %v1295_v13  ;;  %v1326_v46 = vsel %vm1283_vm11, %v1318_v44, 0.0  ;;  %v1316_v59 = vrot.slane %v1273_v55, 1  ;;  %2169 = vmatpush3.bf16.msra.mxu1 %v2290_v36 }
 0x194   : > { %v1334_v49 = vpack.c.bf16 %v1326_v46, %v1326_v46  ;;  %v1285_v53 = vrot.slane %v1273_v55, 7  ;;  %2170 = vmatprep.subr.bf16.mxu1 %v2291_v29 }
 0x195   : > { %1405 = vrot.lane.b32.xlu0 %v2729_v32, %s2306_s15  ;;  %1355 = vrot.lane.b32.xlu1 %v1308_v26, %s2303_s30  ;;  %v1324_v54 = vsel %vm1283_vm11, %v1316_v59, 0.0 }
 0x196   : > { %v1332_v63 = vpack.c.bf16 %v1324_v54, %v1324_v54  ;;  %v1293_v57 = vsel %vm1282_vm10, %v1285_v53, 0.0 }
 0x197   : > { %v2781_v1 = vpack.c.bf16 %v1293_v57, %v1293_v57  ;;  %2171 = vmatpush3.bf16.msra.mxu1 %v2291_v29  ;;  %v1502_v29 = vsel %vm1024_vm2, 0.0|0.0, %v1354_v18 }
 0x199   : > { %1439 = vrot.lane.b32.xlu0 %v1333_v41, %s2312_s28  ;;  %1383 = vrot.lane.b32.xlu1 %v1333_v41, %s2304_s11 }
 0x19d   : > { %1472 = vrot.lane.b32.xlu0 %v1311_v47, %s2311_s21  ;;  %1454 = vrot.lane.b32.xlu1 %v2729_v32, %s2310_s18 }
 0x1a1   : > { %1361 = vrot.lane.b32.xlu0 %v1311_v47, %s2303_s30  ;;  %1486 = vrot.lane.b32.xlu1 %v1333_v41, %s2313_s29  ;;  %v2292_v41 = vld [vmem:[%s3022_s6] sm:$0xff]  }
 0x1a2   : > { %2172 = vmatprep.subr.bf16.mxu1 %v2292_v41 }
 0x1a3   : > { %2173 = vmatpush3.bf16.msra.mxu1 %v2292_v41 }
 0x1a5   : > { %1424 = vrot.lane.b32.xlu1 %v1311_v47, %s2308_s27  ;;  %1401 = vrot.lane.b32.xlu0 %v2746_v62, %s2306_s15  ;;  %v1785_v47 = vld [vmem:[%s3024_s8] sm:$0x3] }
 0x1a6   : > { %2194 = vmatprep.subr.msk.bf16.mxu0 %vm1203_vm0, %v1785_v47  ;;  %v1810_v60 = vsel %vm1203_vm0, %v1785_v47, 0  ;;  %vm1623_vm0 = vcmask 523264  }
 0x1a7   : > { %2183 = vmatpush3.bf16.msra.mxu0 %v1810_v60 }
 0x1a9   : > { %1379 = vrot.lane.b32.xlu1 %v1331_v16, %s2304_s11  ;;  %1435 = vrot.lane.b32.xlu0 %v1331_v16, %s2312_s28  ;;  %v2849_v16 = vpop.permute.xlu1 %1466 }
 0x1aa   : > { %2185 = vmatmul.mubr.msk.bf16.vlgmr.msra.gmra.mxu0 %vm999_vm1, %v2119_v39 }
 0x1ab   : > { %2188 = vmatprep.mubr.msk.bf16.mxu0 %vm999_vm1, %v2120_v14 }
 0x1ad   : > { %1420 = vrot.lane.b32.xlu1 %v1309_v43, %s2308_s27  ;;  %1357 = vrot.lane.b32.xlu0 %v1309_v43, %s2303_s30  ;;  %v2863_v14 = vpop.permute.xlu1 %1482 }
 0x1b1   : > { %1407 = vrot.lane.b32.xlu1 %v2759_v45, %s2306_s15  ;;  %1468 = vrot.lane.b32.xlu0 %v1309_v43, %s2311_s21  ;;  %v1378_v43 = vpop.permute.xlu0 %1377 }
 0x1b2   : > { %2189 = vmatmul.mubr.msk.bf16.gmra.mxu0 %vm999_vm1, %v2121_v20  ;;  %vm1703_vm1 = vcmask 588800  }
 0x1b5   : > { %1441 = vrot.lane.b32.xlu1 %v1334_v49, %s2312_s28  ;;  %1456 = vrot.lane.b32.xlu0 %v2759_v45, %s2310_s18 }
 0x1b9   : > { %1488 = vrot.lane.b32.xlu0 %v1334_v49, %s2313_s29 }
 0x1bd   : > { %1385 = vrot.lane.b32.xlu0 %v1334_v49, %s2304_s11 }
 0x1c2   : > { %v2162_v19 = vpop.f32.mrf.mxu0 }
 0x1c3   : > { %v1266_v56 = vadd.f32 %v2162_v19, %v2714_v7 }
 0x1c4   : > { %v1257_v0 = vpop.f32.mrf.mxu0 }
 0x1c5   : > { %v1278_v61 = vmax.f32 %v1266_v56, 0.0  ;;  %v1258_v58 = vadd.f32 %v2714_v7, %v1257_v0 }
 0x1c6   : > { %v2163_v22 = vpop.f32.mrf.mxu0 }
 0x1c7   : > { %v1314_v50 = vpack.c.bf16 %v1278_v61, %v1278_v61  ;;  %v1276_v2 = vmax.f32 %v1258_v58, 0.0  ;;  %v1290_v3 = vrot.slane %v1278_v61, 7  ;;  %v1321_v21 = vrot.slane %v1278_v61, 1 }
 0x1c8   : > { %v1269_v23 = vadd.f32 %v2163_v22, %v2714_v7  ;;  %v1260_v40 = vpop.f32.mrf.mxu0 }
 0x1c9   : > { %1430 = vrot.lane.b32.xlu0 %v1314_v50, %s2308_s27  ;;  %1367 = vrot.lane.b32.xlu1 %v1314_v50, %s2303_s30  ;;  %v1312_v5 = vpack.c.bf16 %v1276_v2, %v1276_v2  ;;  %v1298_v9 = vsel %vm1282_vm10, %v1290_v3, 0.0  ;;  %v1329_v34 = vsel %vm1283_vm11, %v1321_v21, 0.0  ;;  %v1288_v27 = vrot.slane %v1276_v2, 7 }
 0x1ca   : > { %v2800_v24 = vpack.c.bf16 %v1298_v9, %v1298_v9  ;;  %v1279_v25 = vmax.f32 %v1269_v23, 0.0  ;;  %v1337_v26 = vpack.c.bf16 %v1329_v34, %v1329_v34  ;;  %v1319_v35 = vrot.slane %v1276_v2, 1 }
 0x1cb   : > { %v1296_v31 = vsel %vm1282_vm10, %v1288_v27, 0.0  ;;  %v1261_v51 = vadd.f32 %v2714_v7, %v1260_v40  ;;  %v1525_v40 = vsel %vm1058_vm4, %v1502_v29, %v1378_v43 }
 0x1cc   : > { %v1341_v30 = vpack.c.bf16 %v1279_v25, %v1279_v25  ;;  %v2828_v52 = vpack.c.bf16 %v1296_v31, %v1296_v31  ;;  %v1327_v28 = vsel %vm1283_vm11, %v1319_v35, 0.0  ;;  %v1338_v55 = vrot.slane %v1279_v25, 7 }
 0x1cd   : > { %1381 = vrot.lane.b32.xlu0 %v1332_v63, %s2304_s11  ;;  %1478 = vrot.lane.b32.xlu1 %v1314_v50, %s2311_s21  ;;  %v1277_v48 = vmax.f32 %v1261_v51, 0.0  ;;  %v1335_v11 = vpack.c.bf16 %v1327_v28, %v1327_v28  ;;  %v1342_v13 = vrot.slane %v1279_v25, 1 }
 0x1ce   : > { %v1339_v37 = vsel %vm1282_vm10, %v1338_v55, 0.0 }
 0x1cf   : > { %v1313_v7 = vpack.c.bf16 %v1277_v48, %v1277_v48  ;;  %v1320_v38 = vrot.slane %v1277_v48, 1  ;;  %v1340_v39 = vpack.c.bf16 %v1339_v37, %v1339_v37  ;;  %v1289_v10 = vrot.slane %v1277_v48, 7 }
 0x1d0   : > { %v1343_v49 = vsel %vm1283_vm11, %v1342_v13, 0.0 }
 0x1d1   : > { %1452 = vrot.lane.b32.xlu0 %v2781_v1, %s2310_s18  ;;  %1403 = vrot.lane.b32.xlu1 %v2781_v1, %s2306_s15  ;;  %v1328_v12 = vsel %vm1283_vm11, %v1320_v38, 0.0  ;;  %v1297_v46 = vsel %vm1282_vm10, %v1289_v10, 0.0  ;;  %v1344_v59 = vpack.c.bf16 %v1343_v49, %v1343_v49 }
 0x1d2   : > { %v1336_v44 = vpack.c.bf16 %v1328_v12, %v1328_v12  ;;  %v2869_v20 = vpack.c.bf16 %v1297_v46, %v1297_v46 }
 0x1d5   : > { %1484 = vrot.lane.b32.xlu0 %v1332_v63, %s2313_s29  ;;  %1437 = vrot.lane.b32.xlu1 %v1332_v63, %s2312_s28 }
 0x1d9   : > { %1426 = vrot.lane.b32.xlu0 %v1312_v5, %s2308_s27  ;;  %1474 = vrot.lane.b32.xlu1 %v1312_v5, %s2311_s21 }
 0x1dd   : > { %1413 = vrot.lane.b32.xlu0 %v2800_v24, %s2306_s15  ;;  %1363 = vrot.lane.b32.xlu1 %v1312_v5, %s2303_s30 }
 0x1e1   : > { %1447 = vrot.lane.b32.xlu0 %v1337_v26, %s2312_s28  ;;  %1391 = vrot.lane.b32.xlu1 %v1337_v26, %s2304_s11 }
 0x1e5   : > { %1480 = vrot.lane.b32.xlu0 %v1341_v30, %s2311_s21  ;;  %1462 = vrot.lane.b32.xlu1 %v2800_v24, %s2310_s18 }
 0x1e9   : > { %1494 = vrot.lane.b32.xlu1 %v1337_v26, %s2313_s29  ;;  %1409 = vrot.lane.b32.xlu0 %v2828_v52, %s2306_s15 }
 0x1ed   : > { %1432 = vrot.lane.b32.xlu1 %v1341_v30, %s2308_s27  ;;  %1443 = vrot.lane.b32.xlu0 %v1335_v11, %s2312_s28 }
 0x1f1   : > { %1365 = vrot.lane.b32.xlu0 %v1313_v7, %s2303_s30  ;;  %1458 = vrot.lane.b32.xlu1 %v2828_v52, %s2310_s18 }
 0x1f5   : > { %1476 = vrot.lane.b32.xlu0 %v1313_v7, %s2311_s21  ;;  %1490 = vrot.lane.b32.xlu1 %v1335_v11, %s2313_s29 }
 0x1f9   : > { %1464 = vrot.lane.b32.xlu0 %v1340_v39, %s2310_s18  ;;  %1387 = vrot.lane.b32.xlu1 %v1335_v11, %s2304_s11 }
 0x1fd   : > { %1389 = vrot.lane.b32.xlu0 %v1336_v44, %s2304_s11  ;;  %1428 = vrot.lane.b32.xlu1 %v1313_v7, %s2308_s27 }
 0x1ff   : > { %v1360_v15 = vpop.permute.xlu1 %1359  ;;  %v1423_v17 = vpop.permute.xlu0 %1422 }
 0x200   : > { %v1511_v33 = vsel %vm1024_vm2, %v2729_v32, %v1360_v15 }
 0x201   : > { %1460 = vrot.lane.b32.xlu0 %v2869_v20, %s2310_s18  ;;  %1415 = vrot.lane.b32.xlu1 %v1340_v39, %s2306_s15  ;;  %s2128_s18 = sshll.u32 %s3028_s14, 6 }
 0x203   : > { %v2876_v19 = vpop.permute.xlu1 %1470  ;;  %v1419_v56 = vpop.permute.xlu0 %1418 }
 0x205   : > { %1492 = vrot.lane.b32.xlu0 %v1336_v44, %s2313_s29  ;;  %1449 = vrot.lane.b32.xlu1 %v1344_v59, %s2312_s28 }
 0x207   : > { %v1356_v61 = vpop.permute.xlu1 %1355  ;;  %v1406_v50 = vpop.permute.xlu0 %1405 }
 0x208   : > { %v1505_v47 = vsel %vm1024_vm2, %v2746_v62, %v1356_v61 }
 0x209   : > { %1496 = vrot.lane.b32.xlu0 %v1344_v59, %s2313_s29  ;;  %1411 = vrot.lane.b32.xlu1 %v2869_v20, %s2306_s15 }
 0x20b   : > { %v1384_v53 = vpop.permute.xlu1 %1383  ;;  %v1440_v54 = vpop.permute.xlu0 %1439 }
 0x20c   : > { %v2886_v63 = vsel %vm1058_vm4, %v1511_v33, %v1384_v53 }
 0x20d   : > { %1445 = vrot.lane.b32.xlu1 %v1336_v44, %s2312_s28 }
 0x20f   : > { %v1473_v57 = vpop.permute.xlu0 %1472  ;;  %v1455_v0 = vpop.permute.xlu1 %1454 }
 0x211   : > { %1498 = vrot.lane.b32.xlu1 %v2309_v42, %s2313_s29  ;;  %s2995_s29 = scalar_lea.vmem %s3026_s10, %s2128_s18 }
 0x213   : > { %v1362_v58 = vpop.permute.xlu0 %1361  ;;  %v1487_v3 = vpop.permute.xlu1 %1486 }
 0x214   : > { %v1514_v23 = vsel %vm1024_vm2, %v2759_v45, %v1362_v58 }
 0x217   : > { %v1402_v2 = vpop.permute.xlu0 %1401  ;;  %v2891_v5 = vpop.permute.xlu1 %1424 }
 0x218   : > { %v1541_v51 = vsel %vm1092_vm6, %v1525_v40, %v1402_v2 }
 0x219   : > { %v1557_v18 = vsel %vm1126_vm8, %v1541_v51, %v1419_v56 }
 0x21b   : > { %v1436_v4 = vpop.permute.xlu0 %1435  ;;  %v1380_v8 = vpop.permute.xlu1 %1379 }
 0x21c   : > { %v1574_v62 = vsel %vm1572_vm13, %v1557_v18, %v1436_v4 }
 0x21f   : > { %v1358_v6 = vpop.permute.xlu0 %1357  ;;  %v1421_v21 = vpop.permute.xlu1 %1420 }
 0x220   : > { %v1508_v30 = vsel %vm1024_vm2, %v2781_v1, %v1358_v6  ;;  %v1527_v1 = vsel %vm1058_vm4, %v1505_v47, %v1380_v8 }
 0x223   : > { %v1469_v32 = vpop.permute.xlu0 %1468  ;;  %v1408_v36 = vpop.permute.xlu1 %1407 }
 0x227   : > { %v1457_v9 = vpop.permute.xlu0 %1456  ;;  %v1442_v25 = vpop.permute.xlu1 %1441 }
 0x22b   : > { %v2893_v22 = vpop.permute.xlu0 %1488 }
 0x22f   : > { %v1386_v34 = vpop.permute.xlu0 %1385 }
 0x230   : > { %v2898_v42 = vsel %vm1058_vm4, %v1514_v23, %v1386_v34 }
 0x23b   : > { %v2900_v26 = vpop.permute.xlu1 %1367  ;;  %v2902_v27 = vpop.permute.xlu0 %1430 }
 0x23f   : > { %v2907_v31 = vpop.permute.xlu1 %1478  ;;  %v1382_v35 = vpop.permute.xlu0 %1381 }
 0x240   : > { %v1529_v45 = vsel %vm1058_vm4, %v1508_v30, %v1382_v35 }
 0x241   : > { %v1545_v41 = vsel %vm1092_vm6, %v1529_v45, %v1406_v50 }
 0x242   : > { %v1561_v28 = vsel %vm1126_vm8, %v1545_v41, %v1423_v17 }
 0x243   : > { %v1578_v60 = vsel %vm1572_vm13, %v1561_v28, %v1440_v54  ;;  %v1404_v48 = vpop.permute.xlu1 %1403  ;;  %v1453_v11 = vpop.permute.xlu0 %1452 }
 0x244   : > { %v1543_v7 = vsel %vm1092_vm6, %v1527_v1, %v1404_v48  ;;  %v1595_v55 = vsel %vm1589_vm14, %v1578_v60, %v1457_v9  ;;  %v1591_v38 = vsel %vm1589_vm14, %v1574_v62, %v1453_v11 }
 0x245   : > { %v1612_v37 = vsel %vm1606_vm15, %v1595_v55, %v1473_v57  ;;  %v1559_v39 = vsel %vm1126_vm8, %v1543_v7, %v1421_v21  ;;  %v1608_v13 = vsel %vm1606_vm15, %v1591_v38, %v1469_v32 }
 0x246   : > { %v1629_v29 = vsel %vm1623_vm0, %v1612_v37, %v2893_v22  ;;  %v1523_v22 = vsel %vm1024_vm2, %v2800_v24, %v2900_v26 }
 0x247   : > { %v1438_v10 = vpop.permute.xlu1 %1437  ;;  %v1485_v12 = vpop.permute.xlu0 %1484 }
 0x248   : > { %v1576_v43 = vsel %vm1572_vm13, %v1559_v39, %v1438_v10  ;;  %v1625_v15 = vsel %vm1623_vm0, %v1608_v13, %v1485_v12 }
 0x249   : > { %v1593_v44 = vsel %vm1589_vm14, %v1576_v43, %v1455_v0 }
 0x24a   : > { %v1610_v46 = vsel %vm1606_vm15, %v1593_v44, %v2876_v19  ;;  %v1547_v19 = vsel %vm1092_vm6, %v2886_v63, %v1408_v36 }
 0x24b   : > { %v1475_v17 = vpop.permute.xlu1 %1474  ;;  %v1427_v49 = vpop.permute.xlu0 %1426  ;;  %v1627_v56 = vsel %vm1623_vm0, %v1610_v46, %v1487_v3  ;;  %v1563_v3 = vsel %vm1126_vm8, %v1547_v19, %v2891_v5 }
 0x24c   : > { %v2104_v59 = vcombine.low %v1625_v15, %v1627_v56  ;;  %v1580_v6 = vsel %vm1572_vm13, %v1563_v3, %v1442_v25 }
 0x24e   : > { %2174 = vmatprep.mubr.msk.bf16.mxu1 %vm1703_vm1, %v2104_v59 }
 0x24f   : > { %v1364_v61 = vpop.permute.xlu1 %1363  ;;  %v1414_v50 = vpop.permute.xlu0 %1413 }
 0x250   : > { %v1517_v48 = vsel %vm1024_vm2, %v2828_v52, %v1364_v61 }
 0x253   : > { %v1392_v33 = vpop.permute.xlu1 %1391  ;;  %v1448_v53 = vpop.permute.xlu0 %1447 }
 0x254   : > { %v1539_v1 = vsel %vm1058_vm4, %v1523_v22, %v1392_v33 }
 0x257   : > { %v1463_v54 = vpop.permute.xlu1 %1462  ;;  %v1481_v57 = vpop.permute.xlu0 %1480 }
 0x25b   : > { %v1495_v0 = vpop.permute.xlu1 %1494  ;;  %v1410_v58 = vpop.permute.xlu0 %1409 }
 0x25f   : > { %v1433_v2 = vpop.permute.xlu1 %1432  ;;  %v1444_v4 = vpop.permute.xlu0 %1443 }
 0x263   : > { %v1459_v32 = vpop.permute.xlu1 %1458  ;;  %v1366_v8 = vpop.permute.xlu0 %1365 }
 0x264   : > { %v1597_v9 = vsel %vm1589_vm14, %v1580_v6, %v1459_v32  ;;  %v1520_v45 = vsel %vm1024_vm2, %v2869_v20, %v1366_v8  ;;  %v1549_v20 = vsel %vm1092_vm6, %v2898_v42, %v1410_v58 }
 0x265   : > { %v1614_v21 = vsel %vm1606_vm15, %v1597_v9, %v1475_v17  ;;  %v1565_v37 = vsel %vm1126_vm8, %v1549_v20, %v1427_v49 }
 0x266   : > { %v1582_v38 = vsel %vm1572_vm13, %v1565_v37, %v1444_v4 }
 0x267   : > { %v1491_v23 = vpop.permute.xlu1 %1490  ;;  %v1477_v34 = vpop.permute.xlu0 %1476 }
 0x268   : > { %v1631_v63 = vsel %vm1623_vm0, %v1614_v21, %v1491_v23 }
 0x269   : > { %v2105_v36 = vcombine.low %v1629_v29, %v1631_v63 }
 0x26b   : > { %v1388_v30 = vpop.permute.xlu1 %1387  ;;  %2175 = vmatmul.mubr.msk.bf16.vlgmr.msra.gmra.mxu1 %vm1703_vm1, %v2105_v36  ;;  %v1465_v5 = vpop.permute.xlu0 %1464 }
 0x26c   : > { %v1535_v7 = vsel %vm1058_vm4, %v1517_v48, %v1388_v30 }
 0x26f   : > { %v1429_v35 = vpop.permute.xlu1 %1428  ;;  %v1390_v25 = vpop.permute.xlu0 %1389 }
 0x270   : > { %v1537_v41 = vsel %vm1058_vm4, %v1520_v45, %v1390_v25 }
 0x271   : > { %v1553_v51 = vsel %vm1092_vm6, %v1537_v41, %v1414_v50 }
 0x272   : > { %v1569_v11 = vsel %vm1126_vm8, %v1553_v51, %v2902_v27 }
 0x273   : > { %v1416_v40 = vpop.permute.xlu1 %1415  ;;  %v1461_v47 = vpop.permute.xlu0 %1460  ;;  %v1586_v52 = vsel %vm1572_vm13, %v1569_v11, %v1448_v53 }
 0x274   : > { %v1555_v60 = vsel %vm1092_vm6, %v1539_v1, %v1416_v40  ;;  %v1599_v42 = vsel %vm1589_vm14, %v1582_v38, %v1461_v47  ;;  %v1603_v12 = vsel %vm1589_vm14, %v1586_v52, %v1465_v5 }
 0x275   : > { %v1571_v26 = vsel %vm1126_vm8, %v1555_v60, %v1433_v2  ;;  %v1616_v46 = vsel %vm1606_vm15, %v1599_v42, %v1477_v34  ;;  %v1620_v49 = vsel %vm1606_vm15, %v1603_v12, %v1481_v57  ;;  %v2103_v57 = vld [vmem:[%s3023_s7] ss:$0 sm:$0xff] }
 0x277   : > { %v1450_v28 = vpop.permute.xlu1 %1449  ;;  %v1493_v55 = vpop.permute.xlu0 %1492 }
 0x278   : > { %v1588_v62 = vsel %vm1572_vm13, %v1571_v26, %v1450_v28  ;;  %v1633_v17 = vsel %vm1623_vm0, %v1616_v46, %v1493_v55 }
 0x279   : > { %v1605_v10 = vsel %vm1589_vm14, %v1588_v62, %v2849_v16 }
 0x27a   : > { %v1622_v56 = vsel %vm1606_vm15, %v1605_v10, %v2863_v14  ;;  %v2117_v14 = vld [vmem:[%s3025_s9] ss:$0 sm:$0xff] }
 0x27b   : > { %v1412_v24 = vpop.permute.xlu1 %1411  ;;  %v1497_v44 = vpop.permute.xlu0 %1496 }
 0x27c   : > { %v1551_v18 = vsel %vm1092_vm6, %v1535_v7, %v1412_v24  ;;  %v1637_v61 = vsel %vm1623_vm0, %v1620_v49, %v1497_v44 }
 0x27d   : > { %v1567_v27 = vsel %vm1126_vm8, %v1551_v18, %v1429_v35 }
 0x27f   : > { %v1446_v39 = vpop.permute.xlu1 %1445 }
 0x280   : > { %v1584_v43 = vsel %vm1572_vm13, %v1567_v27, %v1446_v39 }
 0x281   : > { %v1601_v13 = vsel %vm1589_vm14, %v1584_v43, %v1463_v54 }
 0x282   : > { %v1618_v15 = vsel %vm1606_vm15, %v1601_v13, %v2907_v31  ;;  %v2186_v31 = vpop.f32.mrf.mxu0 }
 0x283   : > { %v1499_v16 = vpop.permute.xlu1 %1498  ;;  %v1635_v59 = vsel %vm1623_vm0, %v1618_v15, %v1495_v0  ;;  %v1855_v58 = vadd.f32 %v2186_v31, %v2117_v14 }
 0x284   : > { %v1639_v50 = vsel %vm1623_vm0, %v1622_v56, %v1499_v16  ;;  %v2106_v33 = vcombine.low %v1633_v17, %v1635_v59  ;;  %v1846_v54 = vpop.f32.mrf.mxu0 }
 0x285   : > { %v2107_v53 = vcombine.low %v1637_v61, %v1639_v50  ;;  %v1847_v4 = vadd.f32 %v2117_v14, %v1846_v54 }
 0x286   : > { %2178 = vmatprep.mubr.msk.bf16.mxu1 %vm1703_vm1, %v2106_v33  ;;  %v2187_v0 = vpop.f32.mrf.mxu0 }
 0x287   : > { %2179 = vmatmul.mubr.msk.bf16.gmra.mxu1 %vm1703_vm1, %v2107_v53  ;;  %v1858_v9 = vadd.f32 %v2187_v0, %v2117_v14 }
 0x288   : > { %v1849_v6 = vpop.f32.mrf.mxu0 }
 0x289   : > { %v1850_v63 = vadd.f32 %v2117_v14, %v1849_v6 }
 0x28a   : > { %v2190_v41 = vpop.f32.mrf.mxu0 }
 0x28b   : > { %v1871_v22 = vadd.f32 %v2190_v41, %v2117_v14 }
 0x28c   : > { %v1862_v47 = vpop.f32.mrf.mxu0 }
 0x28d   : > { %v1863_v48 = vadd.f32 %v2117_v14, %v1862_v47 }
 0x28e   : > { %v2191_v51 = vpop.f32.mrf.mxu0 }
 0x28f   : > { %v1874_v24 = vadd.f32 %v2191_v51, %v2117_v14 }
 0x290   : > { %v1865_v7 = vpop.f32.mrf.mxu0 }
 0x291   : > { %v1866_v52 = vadd.f32 %v2117_v14, %v1865_v7 }
 0x32b   : > { %v2176_v19 = vpop.f32.mrf.mxu1 }
 0x32c   : > { %v1763_v2 = vadd.f32 %v2176_v19, %v2103_v57 }
 0x32d   : > { %v1754_v3 = vpop.f32.mrf.mxu1 }
 0x32e   : > { %v1879_v32 = vadd.f32 %v1855_v58, %v1763_v2  ;;  %v1755_v8 = vadd.f32 %v2103_v57, %v1754_v3 }
 0x32f   : > { %v2177_v21 = vpop.f32.mrf.mxu1 }
 0x330   : > { %v1887_v23 = vmax.f32 %v1879_v32, 0.0  ;;  %v1877_v34 = vadd.f32 %v1847_v4, %v1755_v8  ;;  %v1766_v29 = vadd.f32 %v2177_v21, %v2103_v57 }
 0x331   : > { %v1757_v36 = vpop.f32.mrf.mxu1 }
 0x332   : > { %1895 = vst.msk [vmem:[%s2995_s29 + $0x10] sm:$0xff] %vm1024_vm2, %v1887_v23  ;;  %v1885_v30 = vmax.f32 %v1877_v34, 0.0  ;;  %v1880_v5 = vadd.f32 %v1858_v9, %v1766_v29  ;;  %v1758_v35 = vadd.f32 %v2103_v57, %v1757_v36 }
 0x334   : > { %1893 = vst.msk [vmem:[%s2995_s29] sm:$0xff] %vm1024_vm2, %v1885_v30  ;;  %v1888_v25 = vmax.f32 %v1880_v5, 0.0  ;;  %v1878_v45 = vadd.f32 %v1850_v63, %v1758_v35 }
 0x336   : > { %1896 = vst.msk [vmem:[%s2995_s29 + $0x18] sm:$0xff] %vm1024_vm2, %v1888_v25  ;;  %v1886_v40 = vmax.f32 %v1878_v45, 0.0 }
 0x338   : > { %1894 = vst.msk [vmem:[%s2995_s29 + $0x8] sm:$0xff] %vm1024_vm2, %v1886_v40 }
 0x347   : > { %v2180_v28 = vpop.f32.mrf.mxu1 }
 0x348   : > { %v1779_v1 = vadd.f32 %v2180_v28, %v2103_v57 }
 0x349   : > { %v1770_v60 = vpop.f32.mrf.mxu1 }
 0x34a   : > { %v1883_v20 = vadd.f32 %v1871_v22, %v1779_v1  ;;  %v1771_v11 = vadd.f32 %v2103_v57, %v1770_v60 }
 0x34b   : > { %v2181_v55 = vpop.f32.mrf.mxu1 }
 0x34c   : > { %v1891_v26 = vmax.f32 %v1883_v20, 0.0  ;;  %v1881_v18 = vadd.f32 %v1863_v48, %v1771_v11  ;;  %v1782_v37 = vadd.f32 %v2181_v55, %v2103_v57 }
 0x34d   : > { %v1773_v62 = vpop.f32.mrf.mxu1 }
 0x34e   : > { %1899 = vst.msk [vmem:[%s2995_s29 + $0x30] sm:$0xff] %vm1024_vm2, %v1891_v26  ;;  %v1889_v38 = vmax.f32 %v1881_v18, 0.0  ;;  %v1884_v42 = vadd.f32 %v1874_v24, %v1782_v37  ;;  %v1774_v39 = vadd.f32 %v2103_v57, %v1773_v62 }
 0x350   : > { %1897 = vst.msk [vmem:[%s2995_s29 + $0x20] sm:$0xff] %vm1024_vm2, %v1889_v38  ;;  %v1892_v27 = vmax.f32 %v1884_v42, 0.0  ;;  %v1882_v10 = vadd.f32 %v1866_v52, %v1774_v39 }
 0x352   : > { %1900 = vst.msk [vmem:[%s2995_s29 + $0x38] sm:$0xff] %vm1024_vm2, %v1892_v27  ;;  %v1890_v12 = vmax.f32 %v1882_v10, 0.0 }
 0x354   : > { %1898 = vst.msk [vmem:[%s2995_s29 + $0x28] sm:$0xff] %vm1024_vm2, %v1890_v12 }
 0x355 PF: > { %s20_s13 = sadd.s32 1, %s2299_s13  }
 0x356   : > { %p17_p4 = scmp.ge.s32.totalorder %s20_s13, 4  }
 0x358   :  { %19 = sbr.rel (!%p17_p4) target bundleno = 1 (0x1), region = 101 }

</bundles_post_ra>
